<compile_context>
chip_gen: v7x
topology: tpu7x:2x2x1
jax: 0.10.0
libtpu: 0.0.40
codegen_flags: <defaults>
</compile_context>

<pallas_src>
import jax
import jax.numpy as jnp
from jax.experimental import pallas as pl
from jax.experimental.pallas import tpu as pltpu

_SUBLANE = 8


# ------------------------------ Fused model kernel ----------------------------

def _make_fused_rnn_kernel(T, B_pad, H, L):
    """Fused kernel: L stacked LSTM layers + final Linear.

    Ref order (as passed by pallas_call):
      x_ref (T*B_pad, V_in)                          time-major flattened input
      [w_ih_t (D_in,4H), w_hh_t (H,4H), bias (1,4H)] x L
      w_fc_t (H, V_out), b_fc (1, V_out)
      out_ref (T*B_pad, V_out)
      hseq_scr (T*B_pad, H)   VMEM scratch: last layer's hidden sequence
    """

    def kernel(*refs):
        x_ref = refs[0]
        idx = 1
        layer_refs = []
        for _ in range(L):
            layer_refs.append((refs[idx], refs[idx + 1], refs[idx + 2]))
            idx += 3
        w_fc_ref = refs[idx]
        b_fc_ref = refs[idx + 1]
        out_ref = refs[idx + 2]
        hseq_scr = refs[idx + 3]

        # Load weights once; they stay VMEM/vreg resident for all T*L steps.
        weights = [(wih[...], whh[...], b[...]) for (wih, whh, b) in layer_refs]
        w_fc = w_fc_ref[...]
        b_fc = b_fc_ref[...]

        # h0 = c0 = 0 (PyTorch forward). Carried as SSA values; the time loop
        # is fully unrolled at trace time.
        h = [jnp.zeros((B_pad, H), jnp.float32) for _ in range(L)]
        c = [jnp.zeros((B_pad, H), jnp.float32) for _ in range(L)]

        for t in range(T):                                 # unrolled recurrence
            x_t = x_ref[t * B_pad:(t + 1) * B_pad, :]      # aligned (8, V) slab
            for l in range(L):
                wih, whh, b = weights[l]
                gates = (jnp.dot(x_t, wih, preferred_element_type=jnp.float32)
                         + jnp.dot(h[l], whh, preferred_element_type=jnp.float32)
                         + b)                              # (B_pad, 4H)
                # Two full-width EUP ops, then static lane slices (i, f, g, o).
                sig = jax.nn.sigmoid(gates)
                th = jnp.tanh(gates)
                i_g = sig[:, 0 * H:1 * H]
                f_g = sig[:, 1 * H:2 * H]
                g_g = th[:, 2 * H:3 * H]
                o_g = sig[:, 3 * H:4 * H]
                c[l] = f_g * c[l] + i_g * g_g
                h[l] = o_g * jnp.tanh(c[l])
                x_t = h[l]                                 # feed next layer
            hseq_scr[t * B_pad:(t + 1) * B_pad, :] = x_t   # aligned store

        # Batched FC over all timesteps in one MXU push.
        out_ref[...] = (jnp.dot(hseq_scr[...], w_fc,
                                preferred_element_type=jnp.float32) + b_fc)

    return kernel


def rnn_forward_fused(params, x):
    """x: (T, B, V) -> (T, B, V). Single fused pallas_call, everything in VMEM."""
    T, B, V = x.shape
    H = params["layers"][0]["w_hh_t"].shape[0]
    L = len(params["layers"])

    # Pad batch to a full sublane tile so every per-timestep slab is aligned.
    B_pad = max(_SUBLANE, ((B + _SUBLANE - 1) // _SUBLANE) * _SUBLANE)
    x_p = jnp.zeros((T, B_pad, V), jnp.float32).at[:, :B, :].set(x)
    x_flat = x_p.reshape(T * B_pad, V)                     # time-major flatten

    flat_args = [x_flat]
    for layer in params["layers"]:
        flat_args += [layer["w_ih_t"], layer["w_hh_t"], layer["bias"]]
    flat_args += [params["fc_w_t"], params["fc_b"]]

    vmem_spec = pl.BlockSpec(memory_space=pltpu.MemorySpace.VMEM)
    out_flat = pl.pallas_call(
        _make_fused_rnn_kernel(T, B_pad, H, L),
        out_shape=jax.ShapeDtypeStruct((T * B_pad, V), jnp.float32),
        in_specs=[vmem_spec] * len(flat_args),
        out_specs=vmem_spec,
        scratch_shapes=[pltpu.VMEM((T * B_pad, H), jnp.float32)],
    )(*flat_args)
    return out_flat.reshape(T, B_pad, V)[:, :B, :]


# --------------------------------- Model glue ---------------------------------

def init_params(key, vocab_size, hidden_dim, layer_dim):
    """Deterministic PyTorch-style uniform(-1/sqrt(H), 1/sqrt(H)) init."""
    params = {"layers": []}
    bound = 1.0 / (hidden_dim ** 0.5)
    for l in range(layer_dim):
        d_in = vocab_size if l == 0 else hidden_dim
        key, k1, k2, k3, k4 = jax.random.split(key, 5)
        w_ih = jax.random.uniform(k1, (4 * hidden_dim, d_in), jnp.float32, -bound, bound)
        w_hh = jax.random.uniform(k2, (4 * hidden_dim, hidden_dim), jnp.float32, -bound, bound)
        b_ih = jax.random.uniform(k3, (4 * hidden_dim,), jnp.float32, -bound, bound)
        b_hh = jax.random.uniform(k4, (4 * hidden_dim,), jnp.float32, -bound, bound)
        params["layers"].append({
            "w_ih_t": w_ih.T,                                  # (D_in, 4H)
            "w_hh_t": w_hh.T,                                  # (H, 4H)
            "bias": (b_ih + b_hh).reshape(1, 4 * hidden_dim),  # (1, 4H)
        })
    key, k5, k6 = jax.random.split(key, 3)
    w_fc = jax.random.uniform(k5, (vocab_size, hidden_dim), jnp.float32, -bound, bound)
    b_fc = jax.random.uniform(k6, (vocab_size,), jnp.float32, -bound, bound)
    params["fc_w_t"] = w_fc.T                         # (H, V)
    params["fc_b"] = b_fc.reshape(1, vocab_size)      # (1, V)
    return params


@jax.jit
def rnn_model_forward(params, x):
    """Equivalent to RNNModel.forward in eval mode."""
    # TODO(synk): inter-layer dropout (training-only) is not applied; eval semantics.
    return rnn_forward_fused(params, x)


# ------------------------------- Pure-JAX reference ---------------------------

def _reference_forward(params, x):
    h = x
    H = params["layers"][0]["w_hh_t"].shape[0]
    for layer in params["layers"]:
        w_ih_t, w_hh_t, bias = layer["w_ih_t"], layer["w_hh_t"], layer["bias"]
        B = x.shape[1]

        def step(carry, x_t):
            h_prev, c_prev = carry
            gates = x_t @ w_ih_t + h_prev @ w_hh_t + bias
            i_g = jax.nn.sigmoid(gates[:, 0 * H:1 * H])
            f_g = jax.nn.sigmoid(gates[:, 1 * H:2 * H])
            g_g = jnp.tanh(gates[:, 2 * H:3 * H])
            o_g = jax.nn.sigmoid(gates[:, 3 * H:4 * H])
            c_new = f_g * c_prev + i_g * g_g
            h_new = o_g * jnp.tanh(c_new)
            return (h_new, c_new), h_new

        init = (jnp.zeros((B, H), jnp.float32), jnp.zeros((B, H), jnp.float32))
        _, h = jax.lax.scan(step, init, h)
    return h @ params["fc_w_t"] + params["fc_b"]


# ------------------------------------ main ------------------------------------

if __name__ == "__main__":
    T, B = 8, 2            # num_time_steps, batch_size
    VOCAB = 16             # vocab_size == output_dim
    HIDDEN = 32            # hidden_dim
    LAYERS = 2             # layer_dim (stacked LSTM)

    key = jax.random.PRNGKey(0)
    pkey, xkey = jax.random.split(key)
    params = init_params(pkey, VOCAB, HIDDEN, LAYERS)
    x = jax.random.normal(xkey, (T, B, VOCAB), jnp.float32)   # (T, B, vocab)

    out = rnn_model_forward(params, x)
    out = jax.block_until_ready(out)
    assert out.shape == (T, B, VOCAB), out.shape

    ref = _reference_forward(params, x)
    assert jnp.allclose(out, ref, atol=5e-5, rtol=5e-5), \
        float(jnp.max(jnp.abs(out - ref)))

    print("KERNEL_OK")
</pallas_src>

<mosaic_0001>
module attributes {stable_mosaic.version = 11 : i64} {
  func.func @kernel(%arg0: memref<64x16xf32, #tpu.memory_space<vmem>>, %arg1: memref<16x128xf32, #tpu.memory_space<vmem>>, %arg2: memref<32x128xf32, #tpu.memory_space<vmem>>, %arg3: memref<1x128xf32, #tpu.memory_space<vmem>>, %arg4: memref<32x128xf32, #tpu.memory_space<vmem>>, %arg5: memref<32x128xf32, #tpu.memory_space<vmem>>, %arg6: memref<1x128xf32, #tpu.memory_space<vmem>>, %arg7: memref<32x16xf32, #tpu.memory_space<vmem>>, %arg8: memref<1x16xf32, #tpu.memory_space<vmem>>, %arg9: memref<64x16xf32, #tpu.memory_space<vmem>>, %arg10: memref<64x32xf32, #tpu.memory_space<vmem>>) attributes {dimension_semantics = [], scalar_prefetch = 0 : i64, scratch_operands = 1 : i64, tpu.core_type = #tpu.core_type<tc>} {
    %c0 = arith.constant 0 : index
    %c0_0 = arith.constant 0 : index
    %0 = vector.load %arg1[%c0, %c0_0] : memref<16x128xf32, #tpu.memory_space<vmem>>, vector<16x128xf32>
    %c0_1 = arith.constant 0 : index
    %c0_2 = arith.constant 0 : index
    %1 = vector.load %arg2[%c0_1, %c0_2] : memref<32x128xf32, #tpu.memory_space<vmem>>, vector<32x128xf32>
    %c0_3 = arith.constant 0 : index
    %c0_4 = arith.constant 0 : index
    %2 = vector.load %arg3[%c0_3, %c0_4] : memref<1x128xf32, #tpu.memory_space<vmem>>, vector<1x128xf32>
    %c0_5 = arith.constant 0 : index
    %c0_6 = arith.constant 0 : index
    %3 = vector.load %arg4[%c0_5, %c0_6] : memref<32x128xf32, #tpu.memory_space<vmem>>, vector<32x128xf32>
    %c0_7 = arith.constant 0 : index
    %c0_8 = arith.constant 0 : index
    %4 = vector.load %arg5[%c0_7, %c0_8] : memref<32x128xf32, #tpu.memory_space<vmem>>, vector<32x128xf32>
    %c0_9 = arith.constant 0 : index
    %c0_10 = arith.constant 0 : index
    %5 = vector.load %arg6[%c0_9, %c0_10] : memref<1x128xf32, #tpu.memory_space<vmem>>, vector<1x128xf32>
    %c0_11 = arith.constant 0 : index
    %c0_12 = arith.constant 0 : index
    %6 = vector.load %arg7[%c0_11, %c0_12] : memref<32x16xf32, #tpu.memory_space<vmem>>, vector<32x16xf32>
    %c0_13 = arith.constant 0 : index
    %c0_14 = arith.constant 0 : index
    %7 = vector.load %arg8[%c0_13, %c0_14] : memref<1x16xf32, #tpu.memory_space<vmem>>, vector<1x16xf32>
    %cst = arith.constant 0.000000e+00 : f32
    %8 = vector.broadcast %cst : f32 to vector<8x32xf32>
    %cst_15 = arith.constant 0.000000e+00 : f32
    %9 = vector.broadcast %cst_15 : f32 to vector<8x32xf32>
    %cst_16 = arith.constant 0.000000e+00 : f32
    %10 = vector.broadcast %cst_16 : f32 to vector<8x32xf32>
    %cst_17 = arith.constant 0.000000e+00 : f32
    %11 = vector.broadcast %cst_17 : f32 to vector<8x32xf32>
    %c0_18 = arith.constant 0 : index
    %c0_19 = arith.constant 0 : index
    %12 = vector.load %arg0[%c0_18, %c0_19] : memref<64x16xf32, #tpu.memory_space<vmem>>, vector<8x16xf32>
    %cst_20 = arith.constant dense<0.000000e+00> : vector<8x128xf32>
    %13 = tpu.matmul %12, %0, %cst_20 {dimension_numbers = #tpu.dot_dimension_numbers<[1], [0], [0], [1], [0, 0, 1, 1], [], []>} : vector<8x16xf32>, vector<16x128xf32>, vector<8x128xf32> -> vector<8x128xf32>
    %cst_21 = arith.constant dense<0.000000e+00> : vector<8x128xf32>
    %14 = tpu.matmul %8, %1, %cst_21 {dimension_numbers = #tpu.dot_dimension_numbers<[1], [0], [0], [1], [0, 0, 1, 1], [], []>} : vector<8x32xf32>, vector<32x128xf32>, vector<8x128xf32> -> vector<8x128xf32>
    %15 = arith.addf %13, %14 : vector<8x128xf32>
    %16 = vector.broadcast %2 : vector<1x128xf32> to vector<8x128xf32>
    %17 = arith.addf %15, %16 : vector<8x128xf32>
    %18 = arith.negf %17 : vector<8x128xf32>
    %19 = math.exp %18 : vector<8x128xf32>
    %cst_22 = arith.constant 1.000000e+00 : f32
    %20 = vector.broadcast %cst_22 : f32 to vector<8x128xf32>
    %21 = arith.addf %20, %19 : vector<8x128xf32>
    %22 = arith.divf %20, %21 : vector<8x128xf32>
    %23 = math.tanh %17 : vector<8x128xf32>
    %24 = vector.extract_strided_slice %22 {offsets = [0, 0], sizes = [8, 32], strides = [1, 1]} : vector<8x128xf32> to vector<8x32xf32>
    %25 = vector.extract_strided_slice %22 {offsets = [0, 32], sizes = [8, 32], strides = [1, 1]} : vector<8x128xf32> to vector<8x32xf32>
    %26 = vector.extract_strided_slice %23 {offsets = [0, 64], sizes = [8, 32], strides = [1, 1]} : vector<8x128xf32> to vector<8x32xf32>
    %27 = vector.extract_strided_slice %22 {offsets = [0, 96], sizes = [8, 32], strides = [1, 1]} : vector<8x128xf32> to vector<8x32xf32>
    %28 = arith.mulf %25, %10 : vector<8x32xf32>
    %29 = arith.mulf %24, %26 : vector<8x32xf32>
    %30 = arith.addf %28, %29 : vector<8x32xf32>
    %31 = math.tanh %30 : vector<8x32xf32>
    %32 = arith.mulf %27, %31 : vector<8x32xf32>
    %cst_23 = arith.constant dense<0.000000e+00> : vector<8x128xf32>
    %33 = tpu.matmul %32, %3, %cst_23 {dimension_numbers = #tpu.dot_dimension_numbers<[1], [0], [0], [1], [0, 0, 1, 1], [], []>} : vector<8x32xf32>, vector<32x128xf32>, vector<8x128xf32> -> vector<8x128xf32>
    %cst_24 = arith.constant dense<0.000000e+00> : vector<8x128xf32>
    %34 = tpu.matmul %9, %4, %cst_24 {dimension_numbers = #tpu.dot_dimension_numbers<[1], [0], [0], [1], [0, 0, 1, 1], [], []>} : vector<8x32xf32>, vector<32x128xf32>, vector<8x128xf32> -> vector<8x128xf32>
    %35 = arith.addf %33, %34 : vector<8x128xf32>
    %36 = vector.broadcast %5 : vector<1x128xf32> to vector<8x128xf32>
    %37 = arith.addf %35, %36 : vector<8x128xf32>
    %38 = arith.negf %37 : vector<8x128xf32>
    %39 = math.exp %38 : vector<8x128xf32>
    %cst_25 = arith.constant 1.000000e+00 : f32
    %40 = vector.broadcast %cst_25 : f32 to vector<8x128xf32>
    %41 = arith.addf %40, %39 : vector<8x128xf32>
    %42 = arith.divf %40, %41 : vector<8x128xf32>
    %43 = math.tanh %37 : vector<8x128xf32>
    %44 = vector.extract_strided_slice %42 {offsets = [0, 0], sizes = [8, 32], strides = [1, 1]} : vector<8x128xf32> to vector<8x32xf32>
    %45 = vector.extract_strided_slice %42 {offsets = [0, 32], sizes = [8, 32], strides = [1, 1]} : vector<8x128xf32> to vector<8x32xf32>
    %46 = vector.extract_strided_slice %43 {offsets = [0, 64], sizes = [8, 32], strides = [1, 1]} : vector<8x128xf32> to vector<8x32xf32>
    %47 = vector.extract_strided_slice %42 {offsets = [0, 96], sizes = [8, 32], strides = [1, 1]} : vector<8x128xf32> to vector<8x32xf32>
    %48 = arith.mulf %45, %11 : vector<8x32xf32>
    %49 = arith.mulf %44, %46 : vector<8x32xf32>
    %50 = arith.addf %48, %49 : vector<8x32xf32>
    %51 = math.tanh %50 : vector<8x32xf32>
    %52 = arith.mulf %47, %51 : vector<8x32xf32>
    %c0_26 = arith.constant 0 : index
    %c0_27 = arith.constant 0 : index
    %53 = vector.load %arg10[%c0_26, %c0_27] : memref<64x32xf32, #tpu.memory_space<vmem>>, vector<8x32xf32>
    tpu.vector_store %arg10[%c0_26, %c0_27], %52 {strides = array<i32>} : memref<64x32xf32, #tpu.memory_space<vmem>>, vector<8x32xf32>,
    %c8 = arith.constant 8 : index
    %c0_28 = arith.constant 0 : index
    %54 = vector.load %arg0[%c8, %c0_28] : memref<64x16xf32, #tpu.memory_space<vmem>>, vector<8x16xf32>
    %cst_29 = arith.constant dense<0.000000e+00> : vector<8x128xf32>
    %55 = tpu.matmul %54, %0, %cst_29 {dimension_numbers = #tpu.dot_dimension_numbers<[1], [0], [0], [1], [0, 0, 1, 1], [], []>} : vector<8x16xf32>, vector<16x128xf32>, vector<8x128xf32> -> vector<8x128xf32>
    %cst_30 = arith.constant dense<0.000000e+00> : vector<8x128xf32>
    %56 = tpu.matmul %32, %1, %cst_30 {dimension_numbers = #tpu.dot_dimension_numbers<[1], [0], [0], [1], [0, 0, 1, 1], [], []>} : vector<8x32xf32>, vector<32x128xf32>, vector<8x128xf32> -> vector<8x128xf32>
    %57 = arith.addf %55, %56 : vector<8x128xf32>
    %58 = vector.broadcast %2 : vector<1x128xf32> to vector<8x128xf32>
    %59 = arith.addf %57, %58 : vector<8x128xf32>
    %60 = arith.negf %59 : vector<8x128xf32>
    %61 = math.exp %60 : vector<8x128xf32>
    %cst_31 = arith.constant 1.000000e+00 : f32
    %62 = vector.broadcast %cst_31 : f32 to vector<8x128xf32>
    %63 = arith.addf %62, %61 : vector<8x128xf32>
    %64 = arith.divf %62, %63 : vector<8x128xf32>
    %65 = math.tanh %59 : vector<8x128xf32>
    %66 = vector.extract_strided_slice %64 {offsets = [0, 0], sizes = [8, 32], strides = [1, 1]} : vector<8x128xf32> to vector<8x32xf32>
    %67 = vector.extract_strided_slice %64 {offsets = [0, 32], sizes = [8, 32], strides = [1, 1]} : vector<8x128xf32> to vector<8x32xf32>
    %68 = vector.extract_strided_slice %65 {offsets = [0, 64], sizes = [8, 32], strides = [1, 1]} : vector<8x128xf32> to vector<8x32xf32>
    %69 = vector.extract_strided_slice %64 {offsets = [0, 96], sizes = [8, 32], strides = [1, 1]} : vector<8x128xf32> to vector<8x32xf32>
    %70 = arith.mulf %67, %30 : vector<8x32xf32>
    %71 = arith.mulf %66, %68 : vector<8x32xf32>
    %72 = arith.addf %70, %71 : vector<8x32xf32>
    %73 = math.tanh %72 : vector<8x32xf32>
    %74 = arith.mulf %69, %73 : vector<8x32xf32>
    %cst_32 = arith.constant dense<0.000000e+00> : vector<8x128xf32>
    %75 = tpu.matmul %74, %3, %cst_32 {dimension_numbers = #tpu.dot_dimension_numbers<[1], [0], [0], [1], [0, 0, 1, 1], [], []>} : vector<8x32xf32>, vector<32x128xf32>, vector<8x128xf32> -> vector<8x128xf32>
    %cst_33 = arith.constant dense<0.000000e+00> : vector<8x128xf32>
    %76 = tpu.matmul %52, %4, %cst_33 {dimension_numbers = #tpu.dot_dimension_numbers<[1], [0], [0], [1], [0, 0, 1, 1], [], []>} : vector<8x32xf32>, vector<32x128xf32>, vector<8x128xf32> -> vector<8x128xf32>
    %77 = arith.addf %75, %76 : vector<8x128xf32>
    %78 = vector.broadcast %5 : vector<1x128xf32> to vector<8x128xf32>
    %79 = arith.addf %77, %78 : vector<8x128xf32>
    %80 = arith.negf %79 : vector<8x128xf32>
    %81 = math.exp %80 : vector<8x128xf32>
    %cst_34 = arith.constant 1.000000e+00 : f32
    %82 = vector.broadcast %cst_34 : f32 to vector<8x128xf32>
    %83 = arith.addf %82, %81 : vector<8x128xf32>
    %84 = arith.divf %82, %83 : vector<8x128xf32>
    %85 = math.tanh %79 : vector<8x128xf32>
    %86 = vector.extract_strided_slice %84 {offsets = [0, 0], sizes = [8, 32], strides = [1, 1]} : vector<8x128xf32> to vector<8x32xf32>
    %87 = vector.extract_strided_slice %84 {offsets = [0, 32], sizes = [8, 32], strides = [1, 1]} : vector<8x128xf32> to vector<8x32xf32>
    %88 = vector.extract_strided_slice %85 {offsets = [0, 64], sizes = [8, 32], strides = [1, 1]} : vector<8x128xf32> to vector<8x32xf32>
    %89 = vector.extract_strided_slice %84 {offsets = [0, 96], sizes = [8, 32], strides = [1, 1]} : vector<8x128xf32> to vector<8x32xf32>
    %90 = arith.mulf %87, %50 : vector<8x32xf32>
    %91 = arith.mulf %86, %88 : vector<8x32xf32>
    %92 = arith.addf %90, %91 : vector<8x32xf32>
    %93 = math.tanh %92 : vector<8x32xf32>
    %94 = arith.mulf %89, %93 : vector<8x32xf32>
    %c8_35 = arith.constant 8 : index
    %c0_36 = arith.constant 0 : index
    %95 = vector.load %arg10[%c8_35, %c0_36] : memref<64x32xf32, #tpu.memory_space<vmem>>, vector<8x32xf32>
    tpu.vector_store %arg10[%c8_35, %c0_36], %94 {strides = array<i32>} : memref<64x32xf32, #tpu.memory_space<vmem>>, vector<8x32xf32>,
    %c16 = arith.constant 16 : index
    %c0_37 = arith.constant 0 : index
    %96 = vector.load %arg0[%c16, %c0_37] : memref<64x16xf32, #tpu.memory_space<vmem>>, vector<8x16xf32>
    %cst_38 = arith.constant dense<0.000000e+00> : vector<8x128xf32>
    %97 = tpu.matmul %96, %0, %cst_38 {dimension_numbers = #tpu.dot_dimension_numbers<[1], [0], [0], [1], [0, 0, 1, 1], [], []>} : vector<8x16xf32>, vector<16x128xf32>, vector<8x128xf32> -> vector<8x128xf32>
    %cst_39 = arith.constant dense<0.000000e+00> : vector<8x128xf32>
    %98 = tpu.matmul %74, %1, %cst_39 {dimension_numbers = #tpu.dot_dimension_numbers<[1], [0], [0], [1], [0, 0, 1, 1], [], []>} : vector<8x32xf32>, vector<32x128xf32>, vector<8x128xf32> -> vector<8x128xf32>
    %99 = arith.addf %97, %98 : vector<8x128xf32>
    %100 = vector.broadcast %2 : vector<1x128xf32> to vector<8x128xf32>
    %101 = arith.addf %99, %100 : vector<8x128xf32>
    %102 = arith.negf %101 : vector<8x128xf32>
    %103 = math.exp %102 : vector<8x128xf32>
    %cst_40 = arith.constant 1.000000e+00 : f32
    %104 = vector.broadcast %cst_40 : f32 to vector<8x128xf32>
    %105 = arith.addf %104, %103 : vector<8x128xf32>
    %106 = arith.divf %104, %105 : vector<8x128xf32>
    %107 = math.tanh %101 : vector<8x128xf32>
    %108 = vector.extract_strided_slice %106 {offsets = [0, 0], sizes = [8, 32], strides = [1, 1]} : vector<8x128xf32> to vector<8x32xf32>
    %109 = vector.extract_strided_slice %106 {offsets = [0, 32], sizes = [8, 32], strides = [1, 1]} : vector<8x128xf32> to vector<8x32xf32>
    %110 = vector.extract_strided_slice %107 {offsets = [0, 64], sizes = [8, 32], strides = [1, 1]} : vector<8x128xf32> to vector<8x32xf32>
    %111 = vector.extract_strided_slice %106 {offsets = [0, 96], sizes = [8, 32], strides = [1, 1]} : vector<8x128xf32> to vector<8x32xf32>
    %112 = arith.mulf %109, %72 : vector<8x32xf32>
    %113 = arith.mulf %108, %110 : vector<8x32xf32>
    %114 = arith.addf %112, %113 : vector<8x32xf32>
    %115 = math.tanh %114 : vector<8x32xf32>
    %116 = arith.mulf %111, %115 : vector<8x32xf32>
    %cst_41 = arith.constant dense<0.000000e+00> : vector<8x128xf32>
    %117 = tpu.matmul %116, %3, %cst_41 {dimension_numbers = #tpu.dot_dimension_numbers<[1], [0], [0], [1], [0, 0, 1, 1], [], []>} : vector<8x32xf32>, vector<32x128xf32>, vector<8x128xf32> -> vector<8x128xf32>
    %cst_42 = arith.constant dense<0.000000e+00> : vector<8x128xf32>
    %118 = tpu.matmul %94, %4, %cst_42 {dimension_numbers = #tpu.dot_dimension_numbers<[1], [0], [0], [1], [0, 0, 1, 1], [], []>} : vector<8x32xf32>, vector<32x128xf32>, vector<8x128xf32> -> vector<8x128xf32>
    %119 = arith.addf %117, %118 : vector<8x128xf32>
    %120 = vector.broadcast %5 : vector<1x128xf32> to vector<8x128xf32>
    %121 = arith.addf %119, %120 : vector<8x128xf32>
    %122 = arith.negf %121 : vector<8x128xf32>
    %123 = math.exp %122 : vector<8x128xf32>
    %cst_43 = arith.constant 1.000000e+00 : f32
    %124 = vector.broadcast %cst_43 : f32 to vector<8x128xf32>
    %125 = arith.addf %124, %123 : vector<8x128xf32>
    %126 = arith.divf %124, %125 : vector<8x128xf32>
    %127 = math.tanh %121 : vector<8x128xf32>
    %128 = vector.extract_strided_slice %126 {offsets = [0, 0], sizes = [8, 32], strides = [1, 1]} : vector<8x128xf32> to vector<8x32xf32>
    %129 = vector.extract_strided_slice %126 {offsets = [0, 32], sizes = [8, 32], strides = [1, 1]} : vector<8x128xf32> to vector<8x32xf32>
    %130 = vector.extract_strided_slice %127 {offsets = [0, 64], sizes = [8, 32], strides = [1, 1]} : vector<8x128xf32> to vector<8x32xf32>
    %131 = vector.extract_strided_slice %126 {offsets = [0, 96], sizes = [8, 32], strides = [1, 1]} : vector<8x128xf32> to vector<8x32xf32>
    %132 = arith.mulf %129, %92 : vector<8x32xf32>
    %133 = arith.mulf %128, %130 : vector<8x32xf32>
    %134 = arith.addf %132, %133 : vector<8x32xf32>
    %135 = math.tanh %134 : vector<8x32xf32>
    %136 = arith.mulf %131, %135 : vector<8x32xf32>
    %c16_44 = arith.constant 16 : index
    %c0_45 = arith.constant 0 : index
    %137 = vector.load %arg10[%c16_44, %c0_45] : memref<64x32xf32, #tpu.memory_space<vmem>>, vector<8x32xf32>
    tpu.vector_store %arg10[%c16_44, %c0_45], %136 {strides = array<i32>} : memref<64x32xf32, #tpu.memory_space<vmem>>, vector<8x32xf32>,
    %c24 = arith.constant 24 : index
    %c0_46 = arith.constant 0 : index
    %138 = vector.load %arg0[%c24, %c0_46] : memref<64x16xf32, #tpu.memory_space<vmem>>, vector<8x16xf32>
    %cst_47 = arith.constant dense<0.000000e+00> : vector<8x128xf32>
    %139 = tpu.matmul %138, %0, %cst_47 {dimension_numbers = #tpu.dot_dimension_numbers<[1], [0], [0], [1], [0, 0, 1, 1], [], []>} : vector<8x16xf32>, vector<16x128xf32>, vector<8x128xf32> -> vector<8x128xf32>
    %cst_48 = arith.constant dense<0.000000e+00> : vector<8x128xf32>
    %140 = tpu.matmul %116, %1, %cst_48 {dimension_numbers = #tpu.dot_dimension_numbers<[1], [0], [0], [1], [0, 0, 1, 1], [], []>} : vector<8x32xf32>, vector<32x128xf32>, vector<8x128xf32> -> vector<8x128xf32>
    %141 = arith.addf %139, %140 : vector<8x128xf32>
    %142 = vector.broadcast %2 : vector<1x128xf32> to vector<8x128xf32>
    %143 = arith.addf %141, %142 : vector<8x128xf32>
    %144 = arith.negf %143 : vector<8x128xf32>
    %145 = math.exp %144 : vector<8x128xf32>
    %cst_49 = arith.constant 1.000000e+00 : f32
    %146 = vector.broadcast %cst_49 : f32 to vector<8x128xf32>
    %147 = arith.addf %146, %145 : vector<8x128xf32>
    %148 = arith.divf %146, %147 : vector<8x128xf32>
    %149 = math.tanh %143 : vector<8x128xf32>
    %150 = vector.extract_strided_slice %148 {offsets = [0, 0], sizes = [8, 32], strides = [1, 1]} : vector<8x128xf32> to vector<8x32xf32>
    %151 = vector.extract_strided_slice %148 {offsets = [0, 32], sizes = [8, 32], strides = [1, 1]} : vector<8x128xf32> to vector<8x32xf32>
    %152 = vector.extract_strided_slice %149 {offsets = [0, 64], sizes = [8, 32], strides = [1, 1]} : vector<8x128xf32> to vector<8x32xf32>
    %153 = vector.extract_strided_slice %148 {offsets = [0, 96], sizes = [8, 32], strides = [1, 1]} : vector<8x128xf32> to vector<8x32xf32>
    %154 = arith.mulf %151, %114 : vector<8x32xf32>
    %155 = arith.mulf %150, %152 : vector<8x32xf32>
    %156 = arith.addf %154, %155 : vector<8x32xf32>
    %157 = math.tanh %156 : vector<8x32xf32>
    %158 = arith.mulf %153, %157 : vector<8x32xf32>
    %cst_50 = arith.constant dense<0.000000e+00> : vector<8x128xf32>
    %159 = tpu.matmul %158, %3, %cst_50 {dimension_numbers = #tpu.dot_dimension_numbers<[1], [0], [0], [1], [0, 0, 1, 1], [], []>} : vector<8x32xf32>, vector<32x128xf32>, vector<8x128xf32> -> vector<8x128xf32>
    %cst_51 = arith.constant dense<0.000000e+00> : vector<8x128xf32>
    %160 = tpu.matmul %136, %4, %cst_51 {dimension_numbers = #tpu.dot_dimension_numbers<[1], [0], [0], [1], [0, 0, 1, 1], [], []>} : vector<8x32xf32>, vector<32x128xf32>, vector<8x128xf32> -> vector<8x128xf32>
    %161 = arith.addf %159, %160 : vector<8x128xf32>
    %162 = vector.broadcast %5 : vector<1x128xf32> to vector<8x128xf32>
    %163 = arith.addf %161, %162 : vector<8x128xf32>
    %164 = arith.negf %163 : vector<8x128xf32>
    %165 = math.exp %164 : vector<8x128xf32>
    %cst_52 = arith.constant 1.000000e+00 : f32
    %166 = vector.broadcast %cst_52 : f32 to vector<8x128xf32>
    %167 = arith.addf %166, %165 : vector<8x128xf32>
    %168 = arith.divf %166, %167 : vector<8x128xf32>
    %169 = math.tanh %163 : vector<8x128xf32>
    %170 = vector.extract_strided_slice %168 {offsets = [0, 0], sizes = [8, 32], strides = [1, 1]} : vector<8x128xf32> to vector<8x32xf32>
    %171 = vector.extract_strided_slice %168 {offsets = [0, 32], sizes = [8, 32], strides = [1, 1]} : vector<8x128xf32> to vector<8x32xf32>
    %172 = vector.extract_strided_slice %169 {offsets = [0, 64], sizes = [8, 32], strides = [1, 1]} : vector<8x128xf32> to vector<8x32xf32>
    %173 = vector.extract_strided_slice %168 {offsets = [0, 96], sizes = [8, 32], strides = [1, 1]} : vector<8x128xf32> to vector<8x32xf32>
    %174 = arith.mulf %171, %134 : vector<8x32xf32>
    %175 = arith.mulf %170, %172 : vector<8x32xf32>
    %176 = arith.addf %174, %175 : vector<8x32xf32>
    %177 = math.tanh %176 : vector<8x32xf32>
    %178 = arith.mulf %173, %177 : vector<8x32xf32>
    %c24_53 = arith.constant 24 : index
    %c0_54 = arith.constant 0 : index
    %179 = vector.load %arg10[%c24_53, %c0_54] : memref<64x32xf32, #tpu.memory_space<vmem>>, vector<8x32xf32>
    tpu.vector_store %arg10[%c24_53, %c0_54], %178 {strides = array<i32>} : memref<64x32xf32, #tpu.memory_space<vmem>>, vector<8x32xf32>,
    %c32 = arith.constant 32 : index
    %c0_55 = arith.constant 0 : index
    %180 = vector.load %arg0[%c32, %c0_55] : memref<64x16xf32, #tpu.memory_space<vmem>>, vector<8x16xf32>
    %cst_56 = arith.constant dense<0.000000e+00> : vector<8x128xf32>
    %181 = tpu.matmul %180, %0, %cst_56 {dimension_numbers = #tpu.dot_dimension_numbers<[1], [0], [0], [1], [0, 0, 1, 1], [], []>} : vector<8x16xf32>, vector<16x128xf32>, vector<8x128xf32> -> vector<8x128xf32>
    %cst_57 = arith.constant dense<0.000000e+00> : vector<8x128xf32>
    %182 = tpu.matmul %158, %1, %cst_57 {dimension_numbers = #tpu.dot_dimension_numbers<[1], [0], [0], [1], [0, 0, 1, 1], [], []>} : vector<8x32xf32>, vector<32x128xf32>, vector<8x128xf32> -> vector<8x128xf32>
    %183 = arith.addf %181, %182 : vector<8x128xf32>
    %184 = vector.broadcast %2 : vector<1x128xf32> to vector<8x128xf32>
    %185 = arith.addf %183, %184 : vector<8x128xf32>
    %186 = arith.negf %185 : vector<8x128xf32>
    %187 = math.exp %186 : vector<8x128xf32>
    %cst_58 = arith.constant 1.000000e+00 : f32
    %188 = vector.broadcast %cst_58 : f32 to vector<8x128xf32>
    %189 = arith.addf %188, %187 : vector<8x128xf32>
    %190 = arith.divf %188, %189 : vector<8x128xf32>
    %191 = math.tanh %185 : vector<8x128xf32>
    %192 = vector.extract_strided_slice %190 {offsets = [0, 0], sizes = [8, 32], strides = [1, 1]} : vector<8x128xf32> to vector<8x32xf32>
    %193 = vector.extract_strided_slice %190 {offsets = [0, 32], sizes = [8, 32], strides = [1, 1]} : vector<8x128xf32> to vector<8x32xf32>
    %194 = vector.extract_strided_slice %191 {offsets = [0, 64], sizes = [8, 32], strides = [1, 1]} : vector<8x128xf32> to vector<8x32xf32>
    %195 = vector.extract_strided_slice %190 {offsets = [0, 96], sizes = [8, 32], strides = [1, 1]} : vector<8x128xf32> to vector<8x32xf32>
    %196 = arith.mulf %193, %156 : vector<8x32xf32>
    %197 = arith.mulf %192, %194 : vector<8x32xf32>
    %198 = arith.addf %196, %197 : vector<8x32xf32>
    %199 = math.tanh %198 : vector<8x32xf32>
    %200 = arith.mulf %195, %199 : vector<8x32xf32>
    %cst_59 = arith.constant dense<0.000000e+00> : vector<8x128xf32>
    %201 = tpu.matmul %200, %3, %cst_59 {dimension_numbers = #tpu.dot_dimension_numbers<[1], [0], [0], [1], [0, 0, 1, 1], [], []>} : vector<8x32xf32>, vector<32x128xf32>, vector<8x128xf32> -> vector<8x128xf32>
    %cst_60 = arith.constant dense<0.000000e+00> : vector<8x128xf32>
    %202 = tpu.matmul %178, %4, %cst_60 {dimension_numbers = #tpu.dot_dimension_numbers<[1], [0], [0], [1], [0, 0, 1, 1], [], []>} : vector<8x32xf32>, vector<32x128xf32>, vector<8x128xf32> -> vector<8x128xf32>
    %203 = arith.addf %201, %202 : vector<8x128xf32>
    %204 = vector.broadcast %5 : vector<1x128xf32> to vector<8x128xf32>
    %205 = arith.addf %203, %204 : vector<8x128xf32>
    %206 = arith.negf %205 : vector<8x128xf32>
    %207 = math.exp %206 : vector<8x128xf32>
    %cst_61 = arith.constant 1.000000e+00 : f32
    %208 = vector.broadcast %cst_61 : f32 to vector<8x128xf32>
    %209 = arith.addf %208, %207 : vector<8x128xf32>
    %210 = arith.divf %208, %209 : vector<8x128xf32>
    %211 = math.tanh %205 : vector<8x128xf32>
    %212 = vector.extract_strided_slice %210 {offsets = [0, 0], sizes = [8, 32], strides = [1, 1]} : vector<8x128xf32> to vector<8x32xf32>
    %213 = vector.extract_strided_slice %210 {offsets = [0, 32], sizes = [8, 32], strides = [1, 1]} : vector<8x128xf32> to vector<8x32xf32>
    %214 = vector.extract_strided_slice %211 {offsets = [0, 64], sizes = [8, 32], strides = [1, 1]} : vector<8x128xf32> to vector<8x32xf32>
    %215 = vector.extract_strided_slice %210 {offsets = [0, 96], sizes = [8, 32], strides = [1, 1]} : vector<8x128xf32> to vector<8x32xf32>
    %216 = arith.mulf %213, %176 : vector<8x32xf32>
    %217 = arith.mulf %212, %214 : vector<8x32xf32>
    %218 = arith.addf %216, %217 : vector<8x32xf32>
    %219 = math.tanh %218 : vector<8x32xf32>
    %220 = arith.mulf %215, %219 : vector<8x32xf32>
    %c32_62 = arith.constant 32 : index
    %c0_63 = arith.constant 0 : index
    %221 = vector.load %arg10[%c32_62, %c0_63] : memref<64x32xf32, #tpu.memory_space<vmem>>, vector<8x32xf32>
    tpu.vector_store %arg10[%c32_62, %c0_63], %220 {strides = array<i32>} : memref<64x32xf32, #tpu.memory_space<vmem>>, vector<8x32xf32>,
    %c40 = arith.constant 40 : index
    %c0_64 = arith.constant 0 : index
    %222 = vector.load %arg0[%c40, %c0_64] : memref<64x16xf32, #tpu.memory_space<vmem>>, vector<8x16xf32>
    %cst_65 = arith.constant dense<0.000000e+00> : vector<8x128xf32>
    %223 = tpu.matmul %222, %0, %cst_65 {dimension_numbers = #tpu.dot_dimension_numbers<[1], [0], [0], [1], [0, 0, 1, 1], [], []>} : vector<8x16xf32>, vector<16x128xf32>, vector<8x128xf32> -> vector<8x128xf32>
    %cst_66 = arith.constant dense<0.000000e+00> : vector<8x128xf32>
    %224 = tpu.matmul %200, %1, %cst_66 {dimension_numbers = #tpu.dot_dimension_numbers<[1], [0], [0], [1], [0, 0, 1, 1], [], []>} : vector<8x32xf32>, vector<32x128xf32>, vector<8x128xf32> -> vector<8x128xf32>
    %225 = arith.addf %223, %224 : vector<8x128xf32>
    %226 = vector.broadcast %2 : vector<1x128xf32> to vector<8x128xf32>
    %227 = arith.addf %225, %226 : vector<8x128xf32>
    %228 = arith.negf %227 : vector<8x128xf32>
    %229 = math.exp %228 : vector<8x128xf32>
    %cst_67 = arith.constant 1.000000e+00 : f32
    %230 = vector.broadcast %cst_67 : f32 to vector<8x128xf32>
    %231 = arith.addf %230, %229 : vector<8x128xf32>
    %232 = arith.divf %230, %231 : vector<8x128xf32>
    %233 = math.tanh %227 : vector<8x128xf32>
    %234 = vector.extract_strided_slice %232 {offsets = [0, 0], sizes = [8, 32], strides = [1, 1]} : vector<8x128xf32> to vector<8x32xf32>
    %235 = vector.extract_strided_slice %232 {offsets = [0, 32], sizes = [8, 32], strides = [1, 1]} : vector<8x128xf32> to vector<8x32xf32>
    %236 = vector.extract_strided_slice %233 {offsets = [0, 64], sizes = [8, 32], strides = [1, 1]} : vector<8x128xf32> to vector<8x32xf32>
    %237 = vector.extract_strided_slice %232 {offsets = [0, 96], sizes = [8, 32], strides = [1, 1]} : vector<8x128xf32> to vector<8x32xf32>
    %238 = arith.mulf %235, %198 : vector<8x32xf32>
    %239 = arith.mulf %234, %236 : vector<8x32xf32>
    %240 = arith.addf %238, %239 : vector<8x32xf32>
    %241 = math.tanh %240 : vector<8x32xf32>
    %242 = arith.mulf %237, %241 : vector<8x32xf32>
    %cst_68 = arith.constant dense<0.000000e+00> : vector<8x128xf32>
    %243 = tpu.matmul %242, %3, %cst_68 {dimension_numbers = #tpu.dot_dimension_numbers<[1], [0], [0], [1], [0, 0, 1, 1], [], []>} : vector<8x32xf32>, vector<32x128xf32>, vector<8x128xf32> -> vector<8x128xf32>
    %cst_69 = arith.constant dense<0.000000e+00> : vector<8x128xf32>
    %244 = tpu.matmul %220, %4, %cst_69 {dimension_numbers = #tpu.dot_dimension_numbers<[1], [0], [0], [1], [0, 0, 1, 1], [], []>} : vector<8x32xf32>, vector<32x128xf32>, vector<8x128xf32> -> vector<8x128xf32>
    %245 = arith.addf %243, %244 : vector<8x128xf32>
    %246 = vector.broadcast %5 : vector<1x128xf32> to vector<8x128xf32>
    %247 = arith.addf %245, %246 : vector<8x128xf32>
    %248 = arith.negf %247 : vector<8x128xf32>
    %249 = math.exp %248 : vector<8x128xf32>
    %cst_70 = arith.constant 1.000000e+00 : f32
    %250 = vector.broadcast %cst_70 : f32 to vector<8x128xf32>
    %251 = arith.addf %250, %249 : vector<8x128xf32>
    %252 = arith.divf %250, %251 : vector<8x128xf32>
    %253 = math.tanh %247 : vector<8x128xf32>
    %254 = vector.extract_strided_slice %252 {offsets = [0, 0], sizes = [8, 32], strides = [1, 1]} : vector<8x128xf32> to vector<8x32xf32>
    %255 = vector.extract_strided_slice %252 {offsets = [0, 32], sizes = [8, 32], strides = [1, 1]} : vector<8x128xf32> to vector<8x32xf32>
    %256 = vector.extract_strided_slice %253 {offsets = [0, 64], sizes = [8, 32], strides = [1, 1]} : vector<8x128xf32> to vector<8x32xf32>
    %257 = vector.extract_strided_slice %252 {offsets = [0, 96], sizes = [8, 32], strides = [1, 1]} : vector<8x128xf32> to vector<8x32xf32>
    %258 = arith.mulf %255, %218 : vector<8x32xf32>
    %259 = arith.mulf %254, %256 : vector<8x32xf32>
    %260 = arith.addf %258, %259 : vector<8x32xf32>
    %261 = math.tanh %260 : vector<8x32xf32>
    %262 = arith.mulf %257, %261 : vector<8x32xf32>
    %c40_71 = arith.constant 40 : index
    %c0_72 = arith.constant 0 : index
    %263 = vector.load %arg10[%c40_71, %c0_72] : memref<64x32xf32, #tpu.memory_space<vmem>>, vector<8x32xf32>
    tpu.vector_store %arg10[%c40_71, %c0_72], %262 {strides = array<i32>} : memref<64x32xf32, #tpu.memory_space<vmem>>, vector<8x32xf32>,
    %c48 = arith.constant 48 : index
    %c0_73 = arith.constant 0 : index
    %264 = vector.load %arg0[%c48, %c0_73] : memref<64x16xf32, #tpu.memory_space<vmem>>, vector<8x16xf32>
    %cst_74 = arith.constant dense<0.000000e+00> : vector<8x128xf32>
    %265 = tpu.matmul %264, %0, %cst_74 {dimension_numbers = #tpu.dot_dimension_numbers<[1], [0], [0], [1], [0, 0, 1, 1], [], []>} : vector<8x16xf32>, vector<16x128xf32>, vector<8x128xf32> -> vector<8x128xf32>
    %cst_75 = arith.constant dense<0.000000e+00> : vector<8x128xf32>
    %266 = tpu.matmul %242, %1, %cst_75 {dimension_numbers = #tpu.dot_dimension_numbers<[1], [0], [0], [1], [0, 0, 1, 1], [], []>} : vector<8x32xf32>, vector<32x128xf32>, vector<8x128xf32> -> vector<8x128xf32>
    %267 = arith.addf %265, %266 : vector<8x128xf32>
    %268 = vector.broadcast %2 : vector<1x128xf32> to vector<8x128xf32>
    %269 = arith.addf %267, %268 : vector<8x128xf32>
    %270 = arith.negf %269 : vector<8x128xf32>
    %271 = math.exp %270 : vector<8x128xf32>
    %cst_76 = arith.constant 1.000000e+00 : f32
    %272 = vector.broadcast %cst_76 : f32 to vector<8x128xf32>
    %273 = arith.addf %272, %271 : vector<8x128xf32>
    %274 = arith.divf %272, %273 : vector<8x128xf32>
    %275 = math.tanh %269 : vector<8x128xf32>
    %276 = vector.extract_strided_slice %274 {offsets = [0, 0], sizes = [8, 32], strides = [1, 1]} : vector<8x128xf32> to vector<8x32xf32>
    %277 = vector.extract_strided_slice %274 {offsets = [0, 32], sizes = [8, 32], strides = [1, 1]} : vector<8x128xf32> to vector<8x32xf32>
    %278 = vector.extract_strided_slice %275 {offsets = [0, 64], sizes = [8, 32], strides = [1, 1]} : vector<8x128xf32> to vector<8x32xf32>
    %279 = vector.extract_strided_slice %274 {offsets = [0, 96], sizes = [8, 32], strides = [1, 1]} : vector<8x128xf32> to vector<8x32xf32>
    %280 = arith.mulf %277, %240 : vector<8x32xf32>
    %281 = arith.mulf %276, %278 : vector<8x32xf32>
    %282 = arith.addf %280, %281 : vector<8x32xf32>
    %283 = math.tanh %282 : vector<8x32xf32>
    %284 = arith.mulf %279, %283 : vector<8x32xf32>
    %cst_77 = arith.constant dense<0.000000e+00> : vector<8x128xf32>
    %285 = tpu.matmul %284, %3, %cst_77 {dimension_numbers = #tpu.dot_dimension_numbers<[1], [0], [0], [1], [0, 0, 1, 1], [], []>} : vector<8x32xf32>, vector<32x128xf32>, vector<8x128xf32> -> vector<8x128xf32>
    %cst_78 = arith.constant dense<0.000000e+00> : vector<8x128xf32>
    %286 = tpu.matmul %262, %4, %cst_78 {dimension_numbers = #tpu.dot_dimension_numbers<[1], [0], [0], [1], [0, 0, 1, 1], [], []>} : vector<8x32xf32>, vector<32x128xf32>, vector<8x128xf32> -> vector<8x128xf32>
    %287 = arith.addf %285, %286 : vector<8x128xf32>
    %288 = vector.broadcast %5 : vector<1x128xf32> to vector<8x128xf32>
    %289 = arith.addf %287, %288 : vector<8x128xf32>
    %290 = arith.negf %289 : vector<8x128xf32>
    %291 = math.exp %290 : vector<8x128xf32>
    %cst_79 = arith.constant 1.000000e+00 : f32
    %292 = vector.broadcast %cst_79 : f32 to vector<8x128xf32>
    %293 = arith.addf %292, %291 : vector<8x128xf32>
    %294 = arith.divf %292, %293 : vector<8x128xf32>
    %295 = math.tanh %289 : vector<8x128xf32>
    %296 = vector.extract_strided_slice %294 {offsets = [0, 0], sizes = [8, 32], strides = [1, 1]} : vector<8x128xf32> to vector<8x32xf32>
    %297 = vector.extract_strided_slice %294 {offsets = [0, 32], sizes = [8, 32], strides = [1, 1]} : vector<8x128xf32> to vector<8x32xf32>
    %298 = vector.extract_strided_slice %295 {offsets = [0, 64], sizes = [8, 32], strides = [1, 1]} : vector<8x128xf32> to vector<8x32xf32>
    %299 = vector.extract_strided_slice %294 {offsets = [0, 96], sizes = [8, 32], strides = [1, 1]} : vector<8x128xf32> to vector<8x32xf32>
    %300 = arith.mulf %297, %260 : vector<8x32xf32>
    %301 = arith.mulf %296, %298 : vector<8x32xf32>
    %302 = arith.addf %300, %301 : vector<8x32xf32>
    %303 = math.tanh %302 : vector<8x32xf32>
    %304 = arith.mulf %299, %303 : vector<8x32xf32>
    %c48_80 = arith.constant 48 : index
    %c0_81 = arith.constant 0 : index
    %305 = vector.load %arg10[%c48_80, %c0_81] : memref<64x32xf32, #tpu.memory_space<vmem>>, vector<8x32xf32>
    tpu.vector_store %arg10[%c48_80, %c0_81], %304 {strides = array<i32>} : memref<64x32xf32, #tpu.memory_space<vmem>>, vector<8x32xf32>,
    %c56 = arith.constant 56 : index
    %c0_82 = arith.constant 0 : index
    %306 = vector.load %arg0[%c56, %c0_82] : memref<64x16xf32, #tpu.memory_space<vmem>>, vector<8x16xf32>
    %cst_83 = arith.constant dense<0.000000e+00> : vector<8x128xf32>
    %307 = tpu.matmul %306, %0, %cst_83 {dimension_numbers = #tpu.dot_dimension_numbers<[1], [0], [0], [1], [0, 0, 1, 1], [], []>} : vector<8x16xf32>, vector<16x128xf32>, vector<8x128xf32> -> vector<8x128xf32>
    %cst_84 = arith.constant dense<0.000000e+00> : vector<8x128xf32>
    %308 = tpu.matmul %284, %1, %cst_84 {dimension_numbers = #tpu.dot_dimension_numbers<[1], [0], [0], [1], [0, 0, 1, 1], [], []>} : vector<8x32xf32>, vector<32x128xf32>, vector<8x128xf32> -> vector<8x128xf32>
    %309 = arith.addf %307, %308 : vector<8x128xf32>
    %310 = vector.broadcast %2 : vector<1x128xf32> to vector<8x128xf32>
    %311 = arith.addf %309, %310 : vector<8x128xf32>
    %312 = arith.negf %311 : vector<8x128xf32>
    %313 = math.exp %312 : vector<8x128xf32>
    %cst_85 = arith.constant 1.000000e+00 : f32
    %314 = vector.broadcast %cst_85 : f32 to vector<8x128xf32>
    %315 = arith.addf %314, %313 : vector<8x128xf32>
    %316 = arith.divf %314, %315 : vector<8x128xf32>
    %317 = math.tanh %311 : vector<8x128xf32>
    %318 = vector.extract_strided_slice %316 {offsets = [0, 0], sizes = [8, 32], strides = [1, 1]} : vector<8x128xf32> to vector<8x32xf32>
    %319 = vector.extract_strided_slice %316 {offsets = [0, 32], sizes = [8, 32], strides = [1, 1]} : vector<8x128xf32> to vector<8x32xf32>
    %320 = vector.extract_strided_slice %317 {offsets = [0, 64], sizes = [8, 32], strides = [1, 1]} : vector<8x128xf32> to vector<8x32xf32>
    %321 = vector.extract_strided_slice %316 {offsets = [0, 96], sizes = [8, 32], strides = [1, 1]} : vector<8x128xf32> to vector<8x32xf32>
    %322 = arith.mulf %319, %282 : vector<8x32xf32>
    %323 = arith.mulf %318, %320 : vector<8x32xf32>
    %324 = arith.addf %322, %323 : vector<8x32xf32>
    %325 = math.tanh %324 : vector<8x32xf32>
    %326 = arith.mulf %321, %325 : vector<8x32xf32>
    %cst_86 = arith.constant dense<0.000000e+00> : vector<8x128xf32>
    %327 = tpu.matmul %326, %3, %cst_86 {dimension_numbers = #tpu.dot_dimension_numbers<[1], [0], [0], [1], [0, 0, 1, 1], [], []>} : vector<8x32xf32>, vector<32x128xf32>, vector<8x128xf32> -> vector<8x128xf32>
    %cst_87 = arith.constant dense<0.000000e+00> : vector<8x128xf32>
    %328 = tpu.matmul %304, %4, %cst_87 {dimension_numbers = #tpu.dot_dimension_numbers<[1], [0], [0], [1], [0, 0, 1, 1], [], []>} : vector<8x32xf32>, vector<32x128xf32>, vector<8x128xf32> -> vector<8x128xf32>
    %329 = arith.addf %327, %328 : vector<8x128xf32>
    %330 = vector.broadcast %5 : vector<1x128xf32> to vector<8x128xf32>
    %331 = arith.addf %329, %330 : vector<8x128xf32>
    %332 = arith.negf %331 : vector<8x128xf32>
    %333 = math.exp %332 : vector<8x128xf32>
    %cst_88 = arith.constant 1.000000e+00 : f32
    %334 = vector.broadcast %cst_88 : f32 to vector<8x128xf32>
    %335 = arith.addf %334, %333 : vector<8x128xf32>
    %336 = arith.divf %334, %335 : vector<8x128xf32>
    %337 = math.tanh %331 : vector<8x128xf32>
    %338 = vector.extract_strided_slice %336 {offsets = [0, 0], sizes = [8, 32], strides = [1, 1]} : vector<8x128xf32> to vector<8x32xf32>
    %339 = vector.extract_strided_slice %336 {offsets = [0, 32], sizes = [8, 32], strides = [1, 1]} : vector<8x128xf32> to vector<8x32xf32>
    %340 = vector.extract_strided_slice %337 {offsets = [0, 64], sizes = [8, 32], strides = [1, 1]} : vector<8x128xf32> to vector<8x32xf32>
    %341 = vector.extract_strided_slice %336 {offsets = [0, 96], sizes = [8, 32], strides = [1, 1]} : vector<8x128xf32> to vector<8x32xf32>
    %342 = arith.mulf %339, %302 : vector<8x32xf32>
    %343 = arith.mulf %338, %340 : vector<8x32xf32>
    %344 = arith.addf %342, %343 : vector<8x32xf32>
    %345 = math.tanh %344 : vector<8x32xf32>
    %346 = arith.mulf %341, %345 : vector<8x32xf32>
    %c56_89 = arith.constant 56 : index
    %c0_90 = arith.constant 0 : index
    %347 = vector.load %arg10[%c56_89, %c0_90] : memref<64x32xf32, #tpu.memory_space<vmem>>, vector<8x32xf32>
    tpu.vector_store %arg10[%c56_89, %c0_90], %346 {strides = array<i32>} : memref<64x32xf32, #tpu.memory_space<vmem>>, vector<8x32xf32>,
    %c0_91 = arith.constant 0 : index
    %c0_92 = arith.constant 0 : index
    %348 = vector.load %arg10[%c0_91, %c0_92] : memref<64x32xf32, #tpu.memory_space<vmem>>, vector<64x32xf32>
    %cst_93 = arith.constant dense<0.000000e+00> : vector<64x16xf32>
    %349 = tpu.matmul %348, %6, %cst_93 {dimension_numbers = #tpu.dot_dimension_numbers<[1], [0], [0], [1], [0, 0, 1, 1], [], []>} : vector<64x32xf32>, vector<32x16xf32>, vector<64x16xf32> -> vector<64x16xf32>
    %350 = vector.broadcast %7 : vector<1x16xf32> to vector<64x16xf32>
    %351 = arith.addf %349, %350 : vector<64x16xf32>
    %c0_94 = arith.constant 0 : index
    %c0_95 = arith.constant 0 : index
    %352 = vector.load %arg9[%c0_94, %c0_95] : memref<64x16xf32, #tpu.memory_space<vmem>>, vector<64x16xf32>
    tpu.vector_store %arg9[%c0_94, %c0_95], %351 {strides = array<i32>} : memref<64x16xf32, #tpu.memory_space<vmem>>, vector<64x16xf32>,
    return
  }
}

</mosaic_0001>

<bundles_post_ra>
// kernel: rnn_model_forward.1
= control target key start
LH: loop header
LB: loop body
LE: loop exit
PB: predicated region body
PF: predicated region fallthrough
CT: control target
= control target key end

     0   :  { %14 = vsyncpa [#allocation4], 0  ;;  %s3893_s30 = smov [#allocation3]   ;;  %s4459_s0 = inlined_call_operand.vmem [shape: f32[64,16], index: 0, kind: input, shape index: {}]   ;;  %s4460_s1 = inlined_call_operand.vmem [shape: f32[16,128], index: 1, kind: input, shape index: {}]   ;;  %s4461_s2 = inlined_call_operand.vmem [shape: f32[32,128], index: 2, kind: input, shape index: {}]   ;;  %s4462_s3 = inlined_call_operand.vmem [shape: f32[1,128], index: 3, kind: input, shape index: {}]   ;;  %s4463_s4 = inlined_call_operand.vmem [shape: f32[32,128], index: 4, kind: input, shape index: {}]   ;;  %s4464_s5 = inlined_call_operand.vmem [shape: f32[32,128], index: 5, kind: input, shape index: {}]   ;;  %s4465_s6 = inlined_call_operand.vmem [shape: f32[1,128], index: 6, kind: input, shape index: {}]   ;;  %s4466_s7 = inlined_call_operand.vmem [shape: f32[32,16], index: 7, kind: input, shape index: {}]   ;;  %s4467_s8 = inlined_call_operand.hbm [shape: f32[1,16], index: 8, kind: input, shape index: {}]   ;;  %s4468_s9 = inlined_call_operand.vmem [shape: f32[64,16], index: 9, kind: output, shape index: {}]  }
   0x1   :  { %s37_s10 = sshll.u32 %s3893_s30, 4  ;;  %s3869_s13 = scalar_lea.hbm %s4467_s8, 16  ;;  %s38_s10 = int_to_ptr.vmem [resolvable:$true] %s37_s10 }
   0x2   :  { %p3870_p0 = scmp.ne.s32.totalorder %s4467_s8, %s3869_s13  ;;  %p3873_p1 = scmp.lt.u32.totalorder %s3869_s13, %s4467_s8 }
   0x4   :  { %p3875_p2 = pnand %p3873_p1, %p3870_p0 }
   0x6   :  { %3878 = shalt.err (!%p3875_p2)
}
   0x7   :  { %s3879_s18 = scalar_lea.vmem %s38_s10, 16  ;;  %s3883_s19 = scalar_lea.vmem %s38_s10, 32 }
   0x8   :  { %p3880_p3 = scmp.ne.s32.totalorder %s38_s10, %s3879_s18  ;;  %p3884_p4 = scmp.lt.s32.totalorder %s38_s10, %s38_s10 }
   0x9   :  { %p3885_p5 = scmp.lt.s32.totalorder %s3883_s19, %s3879_s18 }
   0xb   :  { %p3886_p6 = por %p3885_p5, %p3884_p4 }
   0xd   :  { %p3887_p7 = pnand %p3886_p6, %p3880_p3 }
   0xf   :  { %3890 = shalt.err (!%p3887_p7)
}
  0x10   :  { %40 = dma.hbm_to_vmem [thread:$0]  %s4467_s8, 16, %s38_s10, [#allocation4]  }
  0x11   :  { %3891 = dma.done.wait [#allocation4], 16  }
  0x12   :  { %3892 = vsyncadd [#allocation4], 4294967280  ;;  %v3894_v0 = vmov 0.0|0.0   ;;  %vm3895_vm0 = vmmov 0   ;;  %v3896_v1 = vmov 0.0   ;;  %v46_v2 = vld [vmem:[%s4461_s2] sm:$0xff] }
  0x13   :  { %3557 = vmatprep.subr.bf16.mxu1 %v3894_v0  ;;  %3225 = vmatprep.mubr.msk.f32.mxu1 %vm3895_vm0, %v3896_v1  ;;  %v47_v3 = vld [vmem:[%s4461_s2 + $0x8] sm:$0xff]  ;;  %v48_v4 = vld [vmem:[%s4461_s2 + $0x10] sm:$0xff]  ;;  %v49_v6 = vld [vmem:[%s4461_s2 + $0x18] sm:$0xff]  ;;  %vm140_vm1 = vcmask 130048   ;;  %s3897_s14 = smov 64   ;;  %s3898_s15 = smov 32  }
  0x14   :  { %3572 = vmatprep.subr.bf16.mxu0 %v3894_v0  ;;  %3254 = vmatprep.mubr.msk.f32.mxu0 %vm3895_vm0, %v3896_v1  ;;  %v3976_v5 = vpack.c.bf16 %v47_v3, %v46_v2  ;;  %v3982_v7 = vpack.c.bf16 %v49_v6, %v48_v4  ;;  %v44_v8 = vld [vmem:[%s4460_s1] sm:$0xff]  ;;  %v45_v9 = vld [vmem:[%s4460_s1 + $0x8] sm:$0xff]  ;;  %v57_v31 = vld [vmem:[%s4464_s5 + $0x10] sm:$0xff]  ;;  %vm66_vm2 = vcmask 261120  }
  0x15   :  { %v3992_v10 = vpack.c.bf16 %v45_v9, %v44_v8  ;;  %v65_v11 = vld [vmem:[%s4459_s0] sm:$0xff]  ;;  %v56_v30 = vld [vmem:[%s4464_s5 + $0x8] sm:$0xff]  ;;  %v58_v33 = vld [vmem:[%s4464_s5 + $0x18] sm:$0xff] }
  0x16   :  { %3559 = vmatpush3.bf16.msra.mxu1 %v3976_v5  ;;  %v4009_v14 = vld [vmem:[%s4462_s3] ss:$0 sm:$0xff]  ;;  %v52_v35 = vld [vmem:[%s4463_s4 + $0x8] sm:$0xff]  ;;  %v53_v37 = vld [vmem:[%s4463_s4 + $0x10] sm:$0xff]  ;;  %v4046_v39 = vpack.c.bf16 %v58_v33, %v57_v31 }
  0x17   :  { %3560 = vmatprep.subr.bf16.mxu1 %v3894_v0  ;;  %v55_v29 = vld [vmem:[%s4464_s5] sm:$0xff]  ;;  %v54_v38 = vld [vmem:[%s4463_s4 + $0x18] sm:$0xff]  ;;  %v426_v47 = vld [vmem:[%s4459_s0 + $0x8] sm:$0xff] }
  0x18   :  { %v4026_v32 = vpack.c.bf16 %v56_v30, %v55_v29  ;;  %v51_v34 = vld [vmem:[%s4463_s4] sm:$0xff]  ;;  %v4050_v40 = vpack.c.bf16 %v54_v38, %v53_v37  ;;  %v772_v29 = vld [vmem:[%s4459_s0 + $0x10] sm:$0xff] }
  0x19   :  { %v4037_v36 = vpack.c.bf16 %v52_v35, %v51_v34  ;;  %v4091_v48 = vld [vmem:[%s4465_s6] ss:$0 sm:$0xff] }
  0x1a   :  { %3562 = vmatpush3.bf16.msra.mxu1 %v3982_v7 }
  0x1b   :  { %3563 = vmatprep.subr.bf16.mxu1 %v3894_v0  ;;  %3574 = vmatpush3.bf16.msra.mxu0 %v4037_v36 }
  0x1c   :  { %3575 = vmatprep.subr.bf16.mxu0 %v3894_v0 }
  0x1d   :  { %3226 = vmatmul.mubr.f32.vlgmr.msra.gmra.mrb[0].mxu1 %v3896_v1 }
  0x1e   :  { %3565 = vmatpush3.bf16.msra.mxu1 %v3992_v10  ;;  %3232 = vmatprep.mubr.msk.f32.mxu1 %vm3895_vm0, %v3896_v1 }
  0x1f   :  { %3566 = vmatprep.subr.bf16.mxu1 %v3894_v0  ;;  %3577 = vmatpush3.bf16.msra.mxu0 %v4050_v40 }
  0x20   :  { %3584 = vmatprep.subr.bf16.mxu0 %v3894_v0 }
  0x21   :  { %3233 = vmatmul.mubr.msk.f32.vlgmr.msra.gmra.mrb[2].mxu1 %vm140_vm1, %v65_v11 }
  0x22   :  { %3243 = vmatprep.mubr.msk.f32.mxu1 %vm3895_vm0, %v3896_v1  ;;  %3568 = vmatpush3.bf16.msra.mxu1 %v4026_v32 }
  0x23   :  { %3569 = vmatprep.subr.bf16.mxu1 %v3894_v0 }
  0x26   :  { %3571 = vmatpush3.bf16.msra.mxu1 %v4046_v39 }
  0x27   :  { %3578 = vmatprep.subr.bf16.mxu1 %v3894_v0 }
  0x29   :  { %3244 = vmatmul.mubr.f32.vlgmr.msra.gmra.mrb[4].mxu1 %v3896_v1 }
  0x2a   :  { %3580 = vmatpush3.bf16.msra.mxu1 %v3976_v5  ;;  %3265 = vmatprep.mubr.msk.f32.mxu1 %vm3895_vm0, %v3896_v1 }
  0x2b   :  { %3581 = vmatprep.subr.bf16.mxu1 %v3894_v0 }
  0x2e   :  { %3583 = vmatpush3.bf16.msra.mxu1 %v3982_v7 }
  0x2f   :  { %3593 = vmatprep.subr.bf16.mxu1 %v3894_v0 }
  0xf0   :  { %v136_v12 = vpop.f32.mrb[0].mxu1 }
  0xf1   :  { %v3227_v13 = vpop.f32.mrb[1].mxu1 }
  0xf4   :  { %v210_v15 = vpop.f32.mrb[2].mxu1 }
  0xf5   :  { %v211_v16 = vadd.f32 %v210_v15, %v136_v12  ;;  %v3234_v17 = vpop.f32.mrb[3].mxu1 }
  0xf7   :  { %v220_v18 = vadd.f32 %v4009_v14, %v211_v16 }
  0xf9   :  { %3739 = vtanh.f32 %v220_v18  ;;  %v3006_v20 = vmul.f32 -1.442695, %v220_v18 }
  0xfb   :  { %3741 = vpow2.f32 %v3006_v20 }
  0xfc   :  { %v311_v44 = vpop.f32.mrb[4].mxu1 }
  0xfd   :  { %v3245_v45 = vpop.f32.mrb[5].mxu1 }
 0x103   :  { %v3740_v19 = vpop.eup %3739 }
 0x104   :  { %230 = vrot.lane.b32.xlu0 %v3740_v19, %s3897_s14 }
 0x105   :  { %v3742_v21 = vpop.eup %3741 }
 0x106   :  { %v224_v22 = vadd.f32 1.0, %v3742_v21 }
 0x108   :  { %3743 = vrcp.f32 %v224_v22 }
 0x112   :  { %v3744_v23 = vpop.eup %3743 }
 0x113   :  { %v228_v26 = vmul.f32 0.0, %v3744_v23 }
 0x176   :  { %v231_v24 = vpop.permute.xlu0 %230 }
 0x177   :  { %v233_v25 = vmul.f32 %v3744_v23, %v231_v24 }
 0x179   :  { %235 = vrot.lane.b32.xlu0 %v233_v25, %s3898_s15 }
 0x1eb   :  { %v236_v27 = vpop.permute.xlu0 %235 }
 0x1ec   :  { %v4014_v28 = vadd.f32 %v236_v27, %v228_v26 }
 0x1ee   :  { %3745 = vtanh.f32 %v4014_v28 }
 0x1f8   :  { %v3746_v41 = vpop.eup %3745 }
 0x1f9   :  { %241 = vrot.lane.b32.xlu1 %v3746_v41, %s3897_s14 }
 0x26b   :  { %v242_v42 = vpop.permute.xlu1 %241 }
 0x26c   :  { %v244_v43 = vmul.f32 %v3744_v23, %v242_v42 }
 0x26e   :  { %316 = vrot.lane.b32.xlu1 %v244_v43, %s3898_s15 }
 0x2e0   :  { %v317_v46 = vpop.permute.xlu1 %316 }
 0x2e1   :  { %3255 = vmatmul.mubr.msk.f32.vlgmr.msra.gmra.mrb[0].mxu0 %vm66_vm2, %v317_v46  ;;  %3266 = vmatmul.mubr.msk.f32.vlgmr.msra.gmra.mrb[6].mxu1 %vm66_vm2, %v317_v46 }
 0x2e2   :  { %3586 = vmatpush3.bf16.msra.mxu0 %v3992_v10  ;;  %3272 = vmatprep.mubr.msk.f32.mxu0 %vm3895_vm0, %v3896_v1 }
 0x2e3   :  { %3587 = vmatprep.subr.bf16.mxu0 %v3894_v0  ;;  %3595 = vmatpush3.bf16.msra.mxu1 %v4037_v36 }
 0x2e4   :  { %3596 = vmatprep.subr.bf16.mxu1 %v3894_v0  ;;  %3294 = vmatprep.mubr.msk.f32.mxu1 %vm3895_vm0, %v3896_v1 }
 0x2e5   :  { %3273 = vmatmul.mubr.msk.f32.vlgmr.msra.gmra.mrb[2].mxu0 %vm140_vm1, %v426_v47 }
 0x2e6   :  { %3589 = vmatpush3.bf16.msra.mxu0 %v4026_v32  ;;  %3283 = vmatprep.mubr.msk.f32.mxu0 %vm3895_vm0, %v3896_v1 }
 0x2e7   :  { %3590 = vmatprep.subr.bf16.mxu0 %v3894_v0  ;;  %3598 = vmatpush3.bf16.msra.mxu1 %v4050_v40 }
 0x2e8   :  { %3605 = vmatprep.subr.bf16.mxu1 %v3894_v0 }
 0x2ea   :  { %3592 = vmatpush3.bf16.msra.mxu0 %v4046_v39 }
 0x2eb   :  { %3599 = vmatprep.subr.bf16.mxu0 %v3894_v0 }
 0x3b4   :  { %v386_v49 = vpop.f32.mrb[0].mxu0  ;;  %v493_v50 = vpop.f32.mrb[6].mxu1 }
 0x3b5   :  { %v387_v51 = vadd.f32 %v386_v49, %v311_v44  ;;  %v3256_v52 = vpop.f32.mrb[1].mxu0  ;;  %v3267_v53 = vpop.f32.mrb[7].mxu1 }
 0x3b7   :  { %v396_v54 = vadd.f32 %v4091_v48, %v387_v51 }
 0x3b8   :  { %v566_v55 = vpop.f32.mrb[2].mxu0 }
 0x3b9   :  { %3747 = vtanh.f32 %v396_v54  ;;  %v567_v56 = vadd.f32 %v566_v55, %v493_v50  ;;  %v3274_v57 = vpop.f32.mrb[3].mxu0  ;;  %v3009_v61 = vmul.f32 -1.442695, %v396_v54 }
 0x3bb   :  { %v570_v58 = vadd.f32 %v4009_v14, %v567_v56 }
 0x3bd   :  { %3749 = vtanh.f32 %v570_v58  ;;  %v3012_v62 = vmul.f32 -1.442695, %v570_v58 }
 0x3be   :  { %3751 = vpow2.f32 %v3009_v61 }
 0x3bf   :  { %3753 = vpow2.f32 %v3012_v62 }
 0x3c3   :  { %v3748_v59 = vpop.eup %3747 }
 0x3c4   :  { %406 = vrot.lane.b32.xlu0 %v3748_v59, %s3897_s14 }
 0x3c7   :  { %v3750_v60 = vpop.eup %3749 }
 0x3c8   :  { %580 = vrot.lane.b32.xlu1 %v3750_v60, %s3897_s14  ;;  %v3752_v63 = vpop.eup %3751 }
 0x3c9   :  { %v400_v2 = vadd.f32 1.0, %v3752_v63  ;;  %v3754_v3 = vpop.eup %3753 }
 0x3ca   :  { %v574_v4 = vadd.f32 1.0, %v3754_v3 }
 0x3cb   :  { %3755 = vrcp.f32 %v400_v2 }
 0x3cc   :  { %3757 = vrcp.f32 %v574_v4 }
 0x3d5   :  { %v3756_v6 = vpop.eup %3755 }
 0x3d6   :  { %v3758_v11 = vpop.eup %3757  ;;  %v404_v15 = vmul.f32 0.0, %v3756_v6 }
 0x3d7   :  { %v578_v18 = vmul.f32 %v3758_v11, %v4014_v28 }
 0x436   :  { %v407_v8 = vpop.permute.xlu0 %406 }
 0x437   :  { %v409_v9 = vmul.f32 %v3756_v6, %v407_v8 }
 0x439   :  { %411 = vrot.lane.b32.xlu0 %v409_v9, %s3898_s15 }
 0x43a   :  { %v581_v12 = vpop.permute.xlu1 %580 }
 0x43b   :  { %v583_v13 = vmul.f32 %v3758_v11, %v581_v12 }
 0x43d   :  { %585 = vrot.lane.b32.xlu1 %v583_v13, %s3898_s15 }
 0x4ab   :  { %v412_v16 = vpop.permute.xlu0 %411 }
 0x4ac   :  { %v4099_v17 = vadd.f32 %v412_v16, %v404_v15 }
 0x4ae   :  { %3759 = vtanh.f32 %v4099_v17 }
 0x4af   :  { %v586_v19 = vpop.permute.xlu1 %585 }
 0x4b0   :  { %v4103_v20 = vadd.f32 %v586_v19, %v578_v18 }
 0x4b2   :  { %3761 = vtanh.f32 %v4103_v20 }
 0x4b8   :  { %v3760_v21 = vpop.eup %3759 }
 0x4b9   :  { %417 = vrot.lane.b32.xlu0 %v3760_v21, %s3897_s14 }
 0x4bc   :  { %v3762_v22 = vpop.eup %3761 }
 0x4bd   :  { %591 = vrot.lane.b32.xlu1 %v3762_v22, %s3897_s14 }
 0x52b   :  { %v418_v23 = vpop.permute.xlu0 %417 }
 0x52c   :  { %v420_v24 = vmul.f32 %v3756_v6, %v418_v23 }
 0x52e   :  { %422 = vrot.lane.b32.xlu0 %v420_v24, %s3898_s15 }
 0x52f   :  { %v592_v25 = vpop.permute.xlu1 %591 }
 0x530   :  { %v594_v26 = vmul.f32 %v3758_v11, %v592_v25 }
 0x532   :  { %668 = vrot.lane.b32.xlu1 %v594_v26, %s3898_s15 }
 0x5a0   :  { %v423_v27 = vpop.permute.xlu0 %422 }
 0x5a1   :  { %425 = vst.msk [vmem:[#allocation2] sm:$0xff] %vm66_vm2, %v423_v27  ;;  %3284 = vmatmul.mubr.msk.f32.vlgmr.msra.gmra.mrb[4].mxu0 %vm66_vm2, %v423_v27 }
 0x5a2   :  { %3601 = vmatpush3.bf16.msra.mxu0 %v3976_v5  ;;  %3305 = vmatprep.mubr.msk.f32.mxu0 %vm3895_vm0, %v3896_v1 }
 0x5a3   :  { %3602 = vmatprep.subr.bf16.mxu0 %v3894_v0 }
 0x5a4   :  { %v669_v28 = vpop.permute.xlu1 %668 }
 0x5a5   :  { %3295 = vmatmul.mubr.msk.f32.vlgmr.msra.gmra.mrb[8].mxu1 %vm66_vm2, %v669_v28 }
 0x5a6   :  { %3604 = vmatpush3.bf16.msra.mxu0 %v3982_v7  ;;  %3607 = vmatpush3.bf16.msra.mxu1 %v3992_v10 }
 0x5a7   :  { %3312 = vmatprep.mubr.msk.f32.mxu1 %vm3895_vm0, %v3896_v1  ;;  %3608 = vmatprep.subr.bf16.mxu1 %v3894_v0 }
 0x5a8   :  { %3614 = vmatprep.subr.bf16.mxu0 %v3894_v0 }
 0x5a9   :  { %3306 = vmatmul.mubr.msk.f32.vlgmr.msra.gmra.mrb[6].mxu0 %vm66_vm2, %v669_v28  ;;  %3313 = vmatmul.mubr.msk.f32.vlgmr.msra.gmra.mrb[10].mxu1 %vm140_vm1, %v772_v29 }
 0x5aa   :  { %3610 = vmatpush3.bf16.msra.mxu1 %v4026_v32  ;;  %3616 = vmatpush3.bf16.msra.mxu0 %v4037_v36 }
 0x5ab   :  { %3611 = vmatprep.subr.bf16.mxu1 %v3894_v0  ;;  %3323 = vmatprep.mubr.msk.f32.mxu1 %vm3895_vm0, %v3896_v1 }
 0x5ac   :  { %3617 = vmatprep.subr.bf16.mxu0 %v3894_v0  ;;  %3334 = vmatprep.mubr.msk.f32.mxu0 %vm3895_vm0, %v3896_v1 }
 0x5ae   :  { %3613 = vmatpush3.bf16.msra.mxu1 %v4046_v39  ;;  %3619 = vmatpush3.bf16.msra.mxu0 %v4050_v40 }
 0x5af   :  { %3620 = vmatprep.subr.bf16.mxu1 %v3894_v0  ;;  %3626 = vmatprep.subr.bf16.mxu0 %v3894_v0 }
 0x674   :  { %v663_v30 = vpop.f32.mrb[4].mxu0 }
 0x675   :  { %v3285_v31 = vpop.f32.mrb[5].mxu0 }
 0x678   :  { %v738_v33 = vpop.f32.mrb[8].mxu1 }
 0x679   :  { %v739_v34 = vadd.f32 %v738_v33, %v663_v30  ;;  %v3296_v35 = vpop.f32.mrb[9].mxu1 }
 0x67b   :  { %v742_v37 = vadd.f32 %v4091_v48, %v739_v34 }
 0x67c   :  { %v839_v38 = vpop.f32.mrb[6].mxu0  ;;  %v912_v41 = vpop.f32.mrb[10].mxu1 }
 0x67d   :  { %3763 = vtanh.f32 %v742_v37  ;;  %v3307_v42 = vpop.f32.mrb[7].mxu0  ;;  %v913_v43 = vadd.f32 %v912_v41, %v839_v38  ;;  %v3314_v44 = vpop.f32.mrb[11].mxu1  ;;  %v3015_v49 = vmul.f32 -1.442695, %v742_v37 }
 0x67f   :  { %v916_v45 = vadd.f32 %v4009_v14, %v913_v43 }
 0x681   :  { %3765 = vtanh.f32 %v916_v45  ;;  %v3018_v50 = vmul.f32 -1.442695, %v916_v45 }
 0x682   :  { %3767 = vpow2.f32 %v3015_v49 }
 0x683   :  { %3769 = vpow2.f32 %v3018_v50 }
 0x687   :  { %v3764_v46 = vpop.eup %3763 }
 0x688   :  { %752 = vrot.lane.b32.xlu0 %v3764_v46, %s3897_s14 }
 0x68b   :  { %v3766_v47 = vpop.eup %3765 }
 0x68c   :  { %926 = vrot.lane.b32.xlu1 %v3766_v47, %s3897_s14  ;;  %v3768_v51 = vpop.eup %3767 }
 0x68d   :  { %v746_v52 = vadd.f32 1.0, %v3768_v51  ;;  %v3770_v53 = vpop.eup %3769 }
 0x68e   :  { %v920_v54 = vadd.f32 1.0, %v3770_v53 }
 0x68f   :  { %3771 = vrcp.f32 %v746_v52 }
 0x690   :  { %3773 = vrcp.f32 %v920_v54 }
 0x699   :  { %v3772_v55 = vpop.eup %3771 }
 0x69a   :  { %v3774_v58 = vpop.eup %3773  ;;  %v750_v61 = vmul.f32 %v3772_v55, %v4099_v17  ;;  %v1118_v17 = vld [vmem:[%s4459_s0 + $0x18] sm:$0xff] }
 0x69b   :  { %v924_v2 = vmul.f32 %v3774_v58, %v4103_v20 }
 0x6fa   :  { %v753_v56 = vpop.permute.xlu0 %752 }
 0x6fb   :  { %v755_v57 = vmul.f32 %v3772_v55, %v753_v56 }
 0x6fd   :  { %757 = vrot.lane.b32.xlu0 %v755_v57, %s3898_s15 }
 0x6fe   :  { %v927_v59 = vpop.permute.xlu1 %926 }
 0x6ff   :  { %v929_v60 = vmul.f32 %v3774_v58, %v927_v59 }
 0x701   :  { %931 = vrot.lane.b32.xlu1 %v929_v60, %s3898_s15 }
 0x76f   :  { %v758_v62 = vpop.permute.xlu0 %757 }
 0x770   :  { %v4147_v63 = vadd.f32 %v758_v62, %v750_v61 }
 0x772   :  { %3775 = vtanh.f32 %v4147_v63 }
 0x773   :  { %v932_v3 = vpop.permute.xlu1 %931 }
 0x774   :  { %v4151_v4 = vadd.f32 %v932_v3, %v924_v2 }
 0x776   :  { %3777 = vtanh.f32 %v4151_v4 }
 0x77c   :  { %v3776_v6 = vpop.eup %3775 }
 0x77d   :  { %763 = vrot.lane.b32.xlu0 %v3776_v6, %s3897_s14 }
 0x780   :  { %v3778_v8 = vpop.eup %3777 }
 0x781   :  { %937 = vrot.lane.b32.xlu1 %v3778_v8, %s3897_s14 }
 0x7ef   :  { %v764_v9 = vpop.permute.xlu0 %763 }
 0x7f0   :  { %v766_v11 = vmul.f32 %v3772_v55, %v764_v9 }
 0x7f2   :  { %768 = vrot.lane.b32.xlu0 %v766_v11, %s3898_s15 }
 0x7f3   :  { %v938_v12 = vpop.permute.xlu1 %937 }
 0x7f4   :  { %v940_v13 = vmul.f32 %v3774_v58, %v938_v12 }
 0x7f6   :  { %1014 = vrot.lane.b32.xlu1 %v940_v13, %s3898_s15 }
 0x864   :  { %v769_v15 = vpop.permute.xlu0 %768 }
 0x865   :  { %771 = vst.msk [vmem:[#allocation2 + $0x8] sm:$0xff] %vm66_vm2, %v769_v15  ;;  %3324 = vmatmul.mubr.msk.f32.vlgmr.msra.gmra.mrb[12].mxu1 %vm66_vm2, %v769_v15 }
 0x866   :  { %3622 = vmatpush3.bf16.msra.mxu1 %v3976_v5  ;;  %3345 = vmatprep.mubr.msk.f32.mxu1 %vm3895_vm0, %v3896_v1 }
 0x867   :  { %3623 = vmatprep.subr.bf16.mxu1 %v3894_v0 }
 0x868   :  { %v1015_v16 = vpop.permute.xlu1 %1014 }
 0x869   :  { %3335 = vmatmul.mubr.msk.f32.vlgmr.msra.gmra.mrb[8].mxu0 %vm66_vm2, %v1015_v16 }
 0x86a   :  { %3625 = vmatpush3.bf16.msra.mxu1 %v3982_v7  ;;  %3628 = vmatpush3.bf16.msra.mxu0 %v3992_v10 }
 0x86b   :  { %3352 = vmatprep.mubr.msk.f32.mxu0 %vm3895_vm0, %v3896_v1  ;;  %3629 = vmatprep.subr.bf16.mxu0 %v3894_v0 }
 0x86c   :  { %3635 = vmatprep.subr.bf16.mxu1 %v3894_v0 }
 0x86d   :  { %3346 = vmatmul.mubr.msk.f32.vlgmr.msra.gmra.mrb[14].mxu1 %vm66_vm2, %v1015_v16  ;;  %3353 = vmatmul.mubr.msk.f32.vlgmr.msra.gmra.mrb[10].mxu0 %vm140_vm1, %v1118_v17 }
 0x86e   :  { %3631 = vmatpush3.bf16.msra.mxu0 %v4026_v32  ;;  %3637 = vmatpush3.bf16.msra.mxu1 %v4037_v36 }
 0x86f   :  { %3632 = vmatprep.subr.bf16.mxu0 %v3894_v0  ;;  %3363 = vmatprep.mubr.msk.f32.mxu0 %vm3895_vm0, %v3896_v1 }
 0x870   :  { %3638 = vmatprep.subr.bf16.mxu1 %v3894_v0  ;;  %3374 = vmatprep.mubr.msk.f32.mxu1 %vm3895_vm0, %v3896_v1 }
 0x872   :  { %3634 = vmatpush3.bf16.msra.mxu0 %v4046_v39  ;;  %3640 = vmatpush3.bf16.msra.mxu1 %v4050_v40 }
 0x873   :  { %3641 = vmatprep.subr.bf16.mxu0 %v3894_v0  ;;  %3647 = vmatprep.subr.bf16.mxu1 %v3894_v0 }
 0x938   :  { %v1009_v18 = vpop.f32.mrb[12].mxu1 }
 0x939   :  { %v3325_v19 = vpop.f32.mrb[13].mxu1 }
 0x93c   :  { %v1084_v20 = vpop.f32.mrb[8].mxu0 }
 0x93d   :  { %v1085_v21 = vadd.f32 %v1084_v20, %v1009_v18  ;;  %v3336_v22 = vpop.f32.mrb[9].mxu0 }
 0x93f   :  { %v1088_v23 = vadd.f32 %v4091_v48, %v1085_v21 }
 0x940   :  { %v1185_v24 = vpop.f32.mrb[14].mxu1  ;;  %v1258_v25 = vpop.f32.mrb[10].mxu0 }
 0x941   :  { %3779 = vtanh.f32 %v1088_v23  ;;  %v3347_v26 = vpop.f32.mrb[15].mxu1  ;;  %v1259_v27 = vadd.f32 %v1258_v25, %v1185_v24  ;;  %v3354_v28 = vpop.f32.mrb[11].mxu0  ;;  %v3021_v33 = vmul.f32 -1.442695, %v1088_v23 }
 0x943   :  { %v1262_v29 = vadd.f32 %v4009_v14, %v1259_v27 }
 0x945   :  { %3781 = vtanh.f32 %v1262_v29  ;;  %v3024_v34 = vmul.f32 -1.442695, %v1262_v29 }
 0x946   :  { %3783 = vpow2.f32 %v3021_v33 }
 0x947   :  { %3785 = vpow2.f32 %v3024_v34 }
 0x94b   :  { %v3780_v30 = vpop.eup %3779 }
 0x94c   :  { %1098 = vrot.lane.b32.xlu0 %v3780_v30, %s3897_s14 }
 0x94f   :  { %v3782_v31 = vpop.eup %3781 }
 0x950   :  { %1272 = vrot.lane.b32.xlu1 %v3782_v31, %s3897_s14  ;;  %v3784_v35 = vpop.eup %3783 }
 0x951   :  { %v1092_v37 = vadd.f32 1.0, %v3784_v35  ;;  %v3786_v38 = vpop.eup %3785 }
 0x952   :  { %v1266_v41 = vadd.f32 1.0, %v3786_v38 }
 0x953   :  { %3787 = vrcp.f32 %v1092_v37 }
 0x954   :  { %3789 = vrcp.f32 %v1266_v41 }
 0x95d   :  { %v3788_v42 = vpop.eup %3787 }
 0x95e   :  { %v3790_v45 = vpop.eup %3789  ;;  %v1096_v49 = vmul.f32 %v3788_v42, %v4147_v63  ;;  %v1464_v63 = vld [vmem:[%s4459_s0 + $0x20] sm:$0xff] }
 0x95f   :  { %v1270_v52 = vmul.f32 %v3790_v45, %v4151_v4 }
 0x9be   :  { %v1099_v43 = vpop.permute.xlu0 %1098 }
 0x9bf   :  { %v1101_v44 = vmul.f32 %v3788_v42, %v1099_v43 }
 0x9c1   :  { %1103 = vrot.lane.b32.xlu0 %v1101_v44, %s3898_s15 }
 0x9c2   :  { %v1273_v46 = vpop.permute.xlu1 %1272 }
 0x9c3   :  { %v1275_v47 = vmul.f32 %v3790_v45, %v1273_v46 }
 0x9c5   :  { %1277 = vrot.lane.b32.xlu1 %v1275_v47, %s3898_s15 }
 0xa33   :  { %v1104_v50 = vpop.permute.xlu0 %1103 }
 0xa34   :  { %v4195_v51 = vadd.f32 %v1104_v50, %v1096_v49 }
 0xa36   :  { %3791 = vtanh.f32 %v4195_v51 }
 0xa37   :  { %v1278_v53 = vpop.permute.xlu1 %1277 }
 0xa38   :  { %v4199_v54 = vadd.f32 %v1278_v53, %v1270_v52 }
 0xa3a   :  { %3793 = vtanh.f32 %v4199_v54 }
 0xa40   :  { %v3792_v55 = vpop.eup %3791 }
 0xa41   :  { %1109 = vrot.lane.b32.xlu0 %v3792_v55, %s3897_s14 }
 0xa44   :  { %v3794_v56 = vpop.eup %3793 }
 0xa45   :  { %1283 = vrot.lane.b32.xlu1 %v3794_v56, %s3897_s14 }
 0xab3   :  { %v1110_v57 = vpop.permute.xlu0 %1109 }
 0xab4   :  { %v1112_v58 = vmul.f32 %v3788_v42, %v1110_v57 }
 0xab6   :  { %1114 = vrot.lane.b32.xlu0 %v1112_v58, %s3898_s15 }
 0xab7   :  { %v1284_v59 = vpop.permute.xlu1 %1283 }
 0xab8   :  { %v1286_v60 = vmul.f32 %v3790_v45, %v1284_v59 }
 0xaba   :  { %1360 = vrot.lane.b32.xlu1 %v1286_v60, %s3898_s15 }
 0xb28   :  { %v1115_v61 = vpop.permute.xlu0 %1114 }
 0xb29   :  { %1117 = vst.msk [vmem:[#allocation2 + $0x10] sm:$0xff] %vm66_vm2, %v1115_v61  ;;  %3364 = vmatmul.mubr.msk.f32.vlgmr.msra.gmra.mrb[12].mxu0 %vm66_vm2, %v1115_v61 }
 0xb2a   :  { %3643 = vmatpush3.bf16.msra.mxu0 %v3976_v5  ;;  %3385 = vmatprep.mubr.msk.f32.mxu0 %vm3895_vm0, %v3896_v1 }
 0xb2b   :  { %3644 = vmatprep.subr.bf16.mxu0 %v3894_v0 }
 0xb2c   :  { %v1361_v62 = vpop.permute.xlu1 %1360 }
 0xb2d   :  { %3375 = vmatmul.mubr.msk.f32.vlgmr.msra.gmra.mrb[16].mxu1 %vm66_vm2, %v1361_v62 }
 0xb2e   :  { %3646 = vmatpush3.bf16.msra.mxu0 %v3982_v7  ;;  %3649 = vmatpush3.bf16.msra.mxu1 %v3992_v10 }
 0xb2f   :  { %3392 = vmatprep.mubr.msk.f32.mxu1 %vm3895_vm0, %v3896_v1  ;;  %3650 = vmatprep.subr.bf16.mxu1 %v3894_v0 }
 0xb30   :  { %3656 = vmatprep.subr.bf16.mxu0 %v3894_v0 }
 0xb31   :  { %3386 = vmatmul.mubr.msk.f32.vlgmr.msra.gmra.mrb[14].mxu0 %vm66_vm2, %v1361_v62  ;;  %3393 = vmatmul.mubr.msk.f32.vlgmr.msra.gmra.mrb[18].mxu1 %vm140_vm1, %v1464_v63 }
 0xb32   :  { %3652 = vmatpush3.bf16.msra.mxu1 %v4026_v32  ;;  %3658 = vmatpush3.bf16.msra.mxu0 %v4037_v36 }
 0xb33   :  { %3653 = vmatprep.subr.bf16.mxu1 %v3894_v0  ;;  %3403 = vmatprep.mubr.msk.f32.mxu1 %vm3895_vm0, %v3896_v1 }
 0xb34   :  { %3659 = vmatprep.subr.bf16.mxu0 %v3894_v0  ;;  %3414 = vmatprep.mubr.msk.f32.mxu0 %vm3895_vm0, %v3896_v1 }
 0xb36   :  { %3655 = vmatpush3.bf16.msra.mxu1 %v4046_v39  ;;  %3661 = vmatpush3.bf16.msra.mxu0 %v4050_v40 }
 0xb37   :  { %3662 = vmatprep.subr.bf16.mxu1 %v3894_v0  ;;  %3668 = vmatprep.subr.bf16.mxu0 %v3894_v0 }
 0xbfc   :  { %v1355_v2 = vpop.f32.mrb[12].mxu0 }
 0xbfd   :  { %v3365_v3 = vpop.f32.mrb[13].mxu0 }
 0xc00   :  { %v1430_v4 = vpop.f32.mrb[16].mxu1 }
 0xc01   :  { %v1431_v6 = vadd.f32 %v1430_v4, %v1355_v2  ;;  %v3376_v8 = vpop.f32.mrb[17].mxu1 }
 0xc03   :  { %v1434_v9 = vadd.f32 %v4091_v48, %v1431_v6 }
 0xc04   :  { %v1531_v11 = vpop.f32.mrb[14].mxu0  ;;  %v1604_v12 = vpop.f32.mrb[18].mxu1 }
 0xc05   :  { %3795 = vtanh.f32 %v1434_v9  ;;  %v3387_v13 = vpop.f32.mrb[15].mxu0  ;;  %v1605_v15 = vadd.f32 %v1604_v12, %v1531_v11  ;;  %v3394_v16 = vpop.f32.mrb[19].mxu1  ;;  %v3027_v20 = vmul.f32 -1.442695, %v1434_v9 }
 0xc07   :  { %v1608_v17 = vadd.f32 %v4009_v14, %v1605_v15 }
 0xc09   :  { %3797 = vtanh.f32 %v1608_v17  ;;  %v3030_v21 = vmul.f32 -1.442695, %v1608_v17 }
 0xc0a   :  { %3799 = vpow2.f32 %v3027_v20 }
 0xc0b   :  { %3801 = vpow2.f32 %v3030_v21 }
 0xc0f   :  { %v3796_v18 = vpop.eup %3795 }
 0xc10   :  { %1444 = vrot.lane.b32.xlu0 %v3796_v18, %s3897_s14 }
 0xc13   :  { %v3798_v19 = vpop.eup %3797 }
 0xc14   :  { %1618 = vrot.lane.b32.xlu1 %v3798_v19, %s3897_s14  ;;  %v3800_v22 = vpop.eup %3799 }
 0xc15   :  { %v1438_v23 = vadd.f32 1.0, %v3800_v22  ;;  %v3802_v24 = vpop.eup %3801 }
 0xc16   :  { %v1612_v25 = vadd.f32 1.0, %v3802_v24 }
 0xc17   :  { %3803 = vrcp.f32 %v1438_v23 }
 0xc18   :  { %3805 = vrcp.f32 %v1612_v25 }
 0xc21   :  { %v3804_v26 = vpop.eup %3803 }
 0xc22   :  { %v3806_v29 = vpop.eup %3805  ;;  %v1442_v33 = vmul.f32 %v3804_v26, %v4195_v51  ;;  %v1810_v51 = vld [vmem:[%s4459_s0 + $0x28] sm:$0xff] }
 0xc23   :  { %v1616_v37 = vmul.f32 %v3806_v29, %v4199_v54 }
 0xc82   :  { %v1445_v27 = vpop.permute.xlu0 %1444 }
 0xc83   :  { %v1447_v28 = vmul.f32 %v3804_v26, %v1445_v27 }
 0xc85   :  { %1449 = vrot.lane.b32.xlu0 %v1447_v28, %s3898_s15 }
 0xc86   :  { %v1619_v30 = vpop.permute.xlu1 %1618 }
 0xc87   :  { %v1621_v31 = vmul.f32 %v3806_v29, %v1619_v30 }
 0xc89   :  { %1623 = vrot.lane.b32.xlu1 %v1621_v31, %s3898_s15 }
 0xcf7   :  { %v1450_v34 = vpop.permute.xlu0 %1449 }
 0xcf8   :  { %v4243_v35 = vadd.f32 %v1450_v34, %v1442_v33 }
 0xcfa   :  { %3807 = vtanh.f32 %v4243_v35 }
 0xcfb   :  { %v1624_v38 = vpop.permute.xlu1 %1623 }
 0xcfc   :  { %v4247_v41 = vadd.f32 %v1624_v38, %v1616_v37 }
 0xcfe   :  { %3809 = vtanh.f32 %v4247_v41 }
 0xd04   :  { %v3808_v42 = vpop.eup %3807 }
 0xd05   :  { %1455 = vrot.lane.b32.xlu0 %v3808_v42, %s3897_s14 }
 0xd08   :  { %v3810_v43 = vpop.eup %3809 }
 0xd09   :  { %1629 = vrot.lane.b32.xlu1 %v3810_v43, %s3897_s14 }
 0xd77   :  { %v1456_v44 = vpop.permute.xlu0 %1455 }
 0xd78   :  { %v1458_v45 = vmul.f32 %v3804_v26, %v1456_v44 }
 0xd7a   :  { %1460 = vrot.lane.b32.xlu0 %v1458_v45, %s3898_s15 }
 0xd7b   :  { %v1630_v46 = vpop.permute.xlu1 %1629 }
 0xd7c   :  { %v1632_v47 = vmul.f32 %v3806_v29, %v1630_v46 }
 0xd7e   :  { %1706 = vrot.lane.b32.xlu1 %v1632_v47, %s3898_s15 }
 0xdec   :  { %v1461_v49 = vpop.permute.xlu0 %1460 }
 0xded   :  { %1463 = vst.msk [vmem:[#allocation2 + $0x18] sm:$0xff] %vm66_vm2, %v1461_v49  ;;  %3404 = vmatmul.mubr.msk.f32.vlgmr.msra.gmra.mrb[20].mxu1 %vm66_vm2, %v1461_v49 }
 0xdee   :  { %3664 = vmatpush3.bf16.msra.mxu1 %v3976_v5  ;;  %3425 = vmatprep.mubr.msk.f32.mxu1 %vm3895_vm0, %v3896_v1 }
 0xdef   :  { %3665 = vmatprep.subr.bf16.mxu1 %v3894_v0 }
 0xdf0   :  { %v1707_v50 = vpop.permute.xlu1 %1706 }
 0xdf1   :  { %3415 = vmatmul.mubr.msk.f32.vlgmr.msra.gmra.mrb[16].mxu0 %vm66_vm2, %v1707_v50 }
 0xdf2   :  { %3667 = vmatpush3.bf16.msra.mxu1 %v3982_v7  ;;  %3670 = vmatpush3.bf16.msra.mxu0 %v3992_v10 }
 0xdf3   :  { %3432 = vmatprep.mubr.msk.f32.mxu0 %vm3895_vm0, %v3896_v1  ;;  %3671 = vmatprep.subr.bf16.mxu0 %v3894_v0 }
 0xdf4   :  { %3677 = vmatprep.subr.bf16.mxu1 %v3894_v0 }
 0xdf5   :  { %3426 = vmatmul.mubr.msk.f32.vlgmr.msra.gmra.mrb[22].mxu1 %vm66_vm2, %v1707_v50  ;;  %3433 = vmatmul.mubr.msk.f32.vlgmr.msra.gmra.mrb[18].mxu0 %vm140_vm1, %v1810_v51 }
 0xdf6   :  { %3673 = vmatpush3.bf16.msra.mxu0 %v4026_v32  ;;  %3679 = vmatpush3.bf16.msra.mxu1 %v4037_v36 }
 0xdf7   :  { %3674 = vmatprep.subr.bf16.mxu0 %v3894_v0  ;;  %3443 = vmatprep.mubr.msk.f32.mxu0 %vm3895_vm0, %v3896_v1 }
 0xdf8   :  { %3680 = vmatprep.subr.bf16.mxu1 %v3894_v0  ;;  %3454 = vmatprep.mubr.msk.f32.mxu1 %vm3895_vm0, %v3896_v1 }
 0xdfa   :  { %3676 = vmatpush3.bf16.msra.mxu0 %v4046_v39  ;;  %3682 = vmatpush3.bf16.msra.mxu1 %v4050_v40 }
 0xdfb   :  { %3683 = vmatprep.subr.bf16.mxu0 %v3894_v0  ;;  %3689 = vmatprep.subr.bf16.mxu1 %v3894_v0 }
 0xec0   :  { %v1701_v52 = vpop.f32.mrb[20].mxu1 }
 0xec1   :  { %v3405_v53 = vpop.f32.mrb[21].mxu1 }
 0xec4   :  { %v1776_v54 = vpop.f32.mrb[16].mxu0 }
 0xec5   :  { %v1777_v55 = vadd.f32 %v1776_v54, %v1701_v52  ;;  %v3416_v56 = vpop.f32.mrb[17].mxu0 }
 0xec7   :  { %v1780_v57 = vadd.f32 %v4091_v48, %v1777_v55 }
 0xec8   :  { %v1877_v58 = vpop.f32.mrb[22].mxu1  ;;  %v1950_v59 = vpop.f32.mrb[18].mxu0 }
 0xec9   :  { %3811 = vtanh.f32 %v1780_v57  ;;  %v3427_v60 = vpop.f32.mrb[23].mxu1  ;;  %v1951_v61 = vadd.f32 %v1950_v59, %v1877_v58  ;;  %v3434_v62 = vpop.f32.mrb[19].mxu0  ;;  %v3033_v4 = vmul.f32 -1.442695, %v1780_v57 }
 0xecb   :  { %v1954_v63 = vadd.f32 %v4009_v14, %v1951_v61 }
 0xecd   :  { %3813 = vtanh.f32 %v1954_v63  ;;  %v3036_v6 = vmul.f32 -1.442695, %v1954_v63 }
 0xece   :  { %3815 = vpow2.f32 %v3033_v4 }
 0xecf   :  { %3817 = vpow2.f32 %v3036_v6 }
 0xed3   :  { %v3812_v2 = vpop.eup %3811 }
 0xed4   :  { %1790 = vrot.lane.b32.xlu0 %v3812_v2, %s3897_s14 }
 0xed7   :  { %v3814_v3 = vpop.eup %3813 }
 0xed8   :  { %1964 = vrot.lane.b32.xlu1 %v3814_v3, %s3897_s14  ;;  %v3816_v8 = vpop.eup %3815 }
 0xed9   :  { %v1784_v9 = vadd.f32 1.0, %v3816_v8  ;;  %v3818_v11 = vpop.eup %3817 }
 0xeda   :  { %v1958_v12 = vadd.f32 1.0, %v3818_v11 }
 0xedb   :  { %3819 = vrcp.f32 %v1784_v9 }
 0xedc   :  { %3821 = vrcp.f32 %v1958_v12 }
 0xee5   :  { %v3820_v13 = vpop.eup %3819 }
 0xee6   :  { %v3822_v17 = vpop.eup %3821  ;;  %v1788_v20 = vmul.f32 %v3820_v13, %v4243_v35  ;;  %v2156_v35 = vld [vmem:[%s4459_s0 + $0x30] sm:$0xff] }
 0xee7   :  { %v1962_v23 = vmul.f32 %v3822_v17, %v4247_v41 }
 0xf46   :  { %v1791_v15 = vpop.permute.xlu0 %1790 }
 0xf47   :  { %v1793_v16 = vmul.f32 %v3820_v13, %v1791_v15 }
 0xf49   :  { %1795 = vrot.lane.b32.xlu0 %v1793_v16, %s3898_s15 }
 0xf4a   :  { %v1965_v18 = vpop.permute.xlu1 %1964 }
 0xf4b   :  { %v1967_v19 = vmul.f32 %v3822_v17, %v1965_v18 }
 0xf4d   :  { %1969 = vrot.lane.b32.xlu1 %v1967_v19, %s3898_s15 }
 0xfbb   :  { %v1796_v21 = vpop.permute.xlu0 %1795 }
 0xfbc   :  { %v4291_v22 = vadd.f32 %v1796_v21, %v1788_v20  ;;  %v2502_v21 = vld [vmem:[%s4459_s0 + $0x38] sm:$0xff] }
 0xfbe   :  { %3823 = vtanh.f32 %v4291_v22 }
 0xfbf   :  { %v1970_v24 = vpop.permute.xlu1 %1969 }
 0xfc0   :  { %v4295_v25 = vadd.f32 %v1970_v24, %v1962_v23 }
 0xfc2   :  { %3825 = vtanh.f32 %v4295_v25 }
 0xfc8   :  { %v3824_v26 = vpop.eup %3823 }
 0xfc9   :  { %1801 = vrot.lane.b32.xlu0 %v3824_v26, %s3897_s14 }
 0xfcc   :  { %v3826_v27 = vpop.eup %3825 }
 0xfcd   :  { %1975 = vrot.lane.b32.xlu1 %v3826_v27, %s3897_s14 }
0x103b   :  { %v1802_v28 = vpop.permute.xlu0 %1801 }
0x103c   :  { %v1804_v29 = vmul.f32 %v3820_v13, %v1802_v28 }
0x103e   :  { %1806 = vrot.lane.b32.xlu0 %v1804_v29, %s3898_s15 }
0x103f   :  { %v1976_v30 = vpop.permute.xlu1 %1975 }
0x1040   :  { %v1978_v31 = vmul.f32 %v3822_v17, %v1976_v30 }
0x1042   :  { %2052 = vrot.lane.b32.xlu1 %v1978_v31, %s3898_s15 }
0x10b0   :  { %v1807_v33 = vpop.permute.xlu0 %1806 }
0x10b1   :  { %1809 = vst.msk [vmem:[#allocation2 + $0x20] sm:$0xff] %vm66_vm2, %v1807_v33  ;;  %3444 = vmatmul.mubr.msk.f32.vlgmr.msra.gmra.mrb[20].mxu0 %vm66_vm2, %v1807_v33 }
0x10b2   :  { %3685 = vmatpush3.bf16.msra.mxu0 %v3976_v5  ;;  %3465 = vmatprep.mubr.msk.f32.mxu0 %vm3895_vm0, %v3896_v1 }
0x10b3   :  { %3686 = vmatprep.subr.bf16.mxu0 %v3894_v0 }
0x10b4   :  { %v2053_v34 = vpop.permute.xlu1 %2052 }
0x10b5   :  { %3455 = vmatmul.mubr.msk.f32.vlgmr.msra.gmra.mrb[24].mxu1 %vm66_vm2, %v2053_v34 }
0x10b6   :  { %3688 = vmatpush3.bf16.msra.mxu0 %v3982_v7  ;;  %3691 = vmatpush3.bf16.msra.mxu1 %v3992_v10 }
0x10b7   :  { %3472 = vmatprep.mubr.msk.f32.mxu1 %vm3895_vm0, %v3896_v1  ;;  %3692 = vmatprep.subr.bf16.mxu1 %v3894_v0 }
0x10b8   :  { %3698 = vmatprep.subr.bf16.mxu0 %v3894_v0 }
0x10b9   :  { %3466 = vmatmul.mubr.msk.f32.vlgmr.msra.gmra.mrb[22].mxu0 %vm66_vm2, %v2053_v34  ;;  %3473 = vmatmul.mubr.msk.f32.vlgmr.msra.gmra.mrb[26].mxu1 %vm140_vm1, %v2156_v35 }
0x10ba   :  { %3694 = vmatpush3.bf16.msra.mxu1 %v4026_v32  ;;  %3700 = vmatpush3.bf16.msra.mxu0 %v4037_v36 }
0x10bb   :  { %3695 = vmatprep.subr.bf16.mxu1 %v3894_v0  ;;  %3483 = vmatprep.mubr.msk.f32.mxu1 %vm3895_vm0, %v3896_v1 }
0x10bc   :  { %3701 = vmatprep.subr.bf16.mxu0 %v3894_v0  ;;  %3494 = vmatprep.mubr.msk.f32.mxu0 %vm3895_vm0, %v3896_v1 }
0x10be   :  { %3697 = vmatpush3.bf16.msra.mxu1 %v4046_v39  ;;  %3703 = vmatpush3.bf16.msra.mxu0 %v4050_v40 }
0x10bf   :  { %3704 = vmatprep.subr.bf16.mxu1 %v3894_v0  ;;  %3710 = vmatprep.subr.bf16.mxu0 %v3894_v0 }
0x1184   :  { %v2047_v37 = vpop.f32.mrb[20].mxu0 }
0x1185   :  { %v3445_v38 = vpop.f32.mrb[21].mxu0 }
0x1188   :  { %v2122_v41 = vpop.f32.mrb[24].mxu1 }
0x1189   :  { %v2123_v42 = vadd.f32 %v2122_v41, %v2047_v37  ;;  %v3456_v43 = vpop.f32.mrb[25].mxu1 }
0x118b   :  { %v2126_v44 = vadd.f32 %v4091_v48, %v2123_v42 }
0x118c   :  { %v2223_v45 = vpop.f32.mrb[22].mxu0  ;;  %v2296_v46 = vpop.f32.mrb[26].mxu1 }
0x118d   :  { %3827 = vtanh.f32 %v2126_v44  ;;  %v3467_v47 = vpop.f32.mrb[23].mxu0  ;;  %v2297_v49 = vadd.f32 %v2296_v46, %v2223_v45  ;;  %v3474_v50 = vpop.f32.mrb[27].mxu1  ;;  %v3039_v54 = vmul.f32 -1.442695, %v2126_v44 }
0x118e   :  { %v60_v50 = vld [vmem:[%s4466_s7] sm:$0xff] }
0x118f   :  { %v2300_v51 = vadd.f32 %v4009_v14, %v2297_v49 }
0x1191   :  { %3829 = vtanh.f32 %v2300_v51  ;;  %v3042_v55 = vmul.f32 -1.442695, %v2300_v51  ;;  %v61_v51 = vld [vmem:[%s4466_s7 + $0x8] sm:$0xff] }
0x1192   :  { %3831 = vpow2.f32 %v3039_v54 }
0x1193   :  { %3833 = vpow2.f32 %v3042_v55 }
0x1197   :  { %v3828_v52 = vpop.eup %3827 }
0x1198   :  { %2136 = vrot.lane.b32.xlu0 %v3828_v52, %s3897_s14  ;;  %v3725_v52 = vpack.c.bf16 %v61_v51, %v60_v50 }
0x119b   :  { %v3830_v53 = vpop.eup %3829 }
0x119c   :  { %2310 = vrot.lane.b32.xlu1 %v3830_v53, %s3897_s14  ;;  %v3832_v56 = vpop.eup %3831 }
0x119d   :  { %v2130_v57 = vadd.f32 1.0, %v3832_v56  ;;  %v3834_v58 = vpop.eup %3833 }
0x119e   :  { %v2304_v59 = vadd.f32 1.0, %v3834_v58 }
0x119f   :  { %3835 = vrcp.f32 %v2130_v57 }
0x11a0   :  { %3837 = vrcp.f32 %v2304_v59  ;;  %v62_v59 = vld [vmem:[%s4466_s7 + $0x10] sm:$0xff] }
0x11a9   :  { %v3836_v60 = vpop.eup %3835 }
0x11aa   :  { %v3838_v62 = vpop.eup %3837  ;;  %v2134_v3 = vmul.f32 %v3836_v60, %v4291_v22 }
0x11ab   :  { %v2308_v8 = vmul.f32 %v3838_v62, %v4295_v25 }
0x120a   :  { %v2137_v61 = vpop.permute.xlu0 %2136 }
0x120b   :  { %v2139_v14 = vmul.f32 %v3836_v60, %v2137_v61 }
0x120d   :  { %2141 = vrot.lane.b32.xlu0 %v2139_v14, %s3898_s15 }
0x120e   :  { %v2311_v63 = vpop.permute.xlu1 %2310 }
0x120f   :  { %v2313_v2 = vmul.f32 %v3838_v62, %v2311_v63 }
0x1211   :  { %2315 = vrot.lane.b32.xlu1 %v2313_v2, %s3898_s15  ;;  %v2849_v2 = vld [vmem:[#allocation2 + $0x8] sm:$0xff] }
0x127f   :  { %v2142_v4 = vpop.permute.xlu0 %2141 }
0x1280   :  { %v4339_v6 = vadd.f32 %v2142_v4, %v2134_v3  ;;  %v2850_v3 = vld [vmem:[#allocation2 + $0x10] sm:$0xff]  ;;  %v2851_v4 = vld [vmem:[#allocation2 + $0x18] sm:$0xff] }
0x1282   :  { %3839 = vtanh.f32 %v4339_v6 }
0x1283   :  { %v2316_v9 = vpop.permute.xlu1 %2315 }
0x1284   :  { %v4343_v11 = vadd.f32 %v2316_v9, %v2308_v8 }
0x1286   :  { %3841 = vtanh.f32 %v4343_v11 }
0x128c   :  { %v3840_v12 = vpop.eup %3839 }
0x128d   :  { %2147 = vrot.lane.b32.xlu0 %v3840_v12, %s3897_s14 }
0x1290   :  { %v3842_v13 = vpop.eup %3841 }
0x1291   :  { %2321 = vrot.lane.b32.xlu1 %v3842_v13, %s3897_s14 }
0x12ff   :  { %v2148_v15 = vpop.permute.xlu0 %2147 }
0x1300   :  { %v2150_v16 = vmul.f32 %v3836_v60, %v2148_v15  ;;  %v63_v60 = vld [vmem:[%s4466_s7 + $0x18] sm:$0xff] }
0x1301   :  { %v3729_v61 = vpack.c.bf16 %v63_v60, %v62_v59 }
0x1302   :  { %2152 = vrot.lane.b32.xlu0 %v2150_v16, %s3898_s15 }
0x1303   :  { %v2322_v17 = vpop.permute.xlu1 %2321 }
0x1304   :  { %v2324_v18 = vmul.f32 %v3838_v62, %v2322_v17  ;;  %v2848_v62 = vld [vmem:[#allocation2] sm:$0xff] }
0x1305   :  { %v3052_v17 = vld [vmem:[#allocation3] ss:$0 sm:$0xff] }
0x1306   :  { %2398 = vrot.lane.b32.xlu1 %v2324_v18, %s3898_s15  ;;  %v3868_v18 = vld [vmem:[%s4465_s6] ss:$0 sm:$0xff] }
0x1374   :  { %v2153_v19 = vpop.permute.xlu0 %2152 }
0x1375   :  { %2155 = vst.msk [vmem:[#allocation2 + $0x28] sm:$0xff] %vm66_vm2, %v2153_v19  ;;  %3484 = vmatmul.mubr.msk.f32.vlgmr.msra.gmra.mrb[28].mxu1 %vm66_vm2, %v2153_v19 }
0x1376   :  { %3706 = vmatpush3.bf16.msra.mxu1 %v3976_v5  ;;  %3505 = vmatprep.mubr.msk.f32.mxu1 %vm3895_vm0, %v3896_v1 }
0x1377   :  { %3707 = vmatprep.subr.bf16.mxu1 %v3894_v0 }
0x1378   :  { %v2399_v20 = vpop.permute.xlu1 %2398 }
0x1379   :  { %3495 = vmatmul.mubr.msk.f32.vlgmr.msra.gmra.mrb[24].mxu0 %vm66_vm2, %v2399_v20 }
0x137a   :  { %3709 = vmatpush3.bf16.msra.mxu1 %v3982_v7  ;;  %3712 = vmatpush3.bf16.msra.mxu0 %v3992_v10 }
0x137b   :  { %3512 = vmatprep.mubr.msk.f32.mxu0 %vm3895_vm0, %v3896_v1  ;;  %3713 = vmatprep.subr.bf16.mxu0 %v3894_v0 }
0x137c   :  { %3719 = vmatprep.subr.bf16.mxu1 %v3894_v0  ;;  %v2853_v8 = vld [vmem:[#allocation2 + $0x28] sm:$0xff] }
0x137d   :  { %3506 = vmatmul.mubr.msk.f32.vlgmr.msra.gmra.mrb[30].mxu1 %vm66_vm2, %v2399_v20  ;;  %3513 = vmatmul.mubr.msk.f32.vlgmr.msra.gmra.mrb[26].mxu0 %vm140_vm1, %v2502_v21 }
0x137e   :  { %3715 = vmatpush3.bf16.msra.mxu0 %v4026_v32  ;;  %3721 = vmatpush3.bf16.msra.mxu1 %v4037_v36 }
0x137f   :  { %3716 = vmatprep.subr.bf16.mxu0 %v3894_v0  ;;  %3523 = vmatprep.mubr.msk.f32.mxu0 %vm3895_vm0, %v3896_v1 }
0x1380   :  { %3722 = vmatprep.subr.bf16.mxu1 %v3894_v0  ;;  %3534 = vmatprep.mubr.msk.f32.mxu1 %vm3895_vm0, %v3896_v1  ;;  %v3867_v1 = vld [vmem:[%s4462_s3] ss:$0 sm:$0xff] }
0x1382   :  { %3718 = vmatpush3.bf16.msra.mxu0 %v4046_v39  ;;  %3724 = vmatpush3.bf16.msra.mxu1 %v4050_v40 }
0x1383   :  { %3726 = vmatprep.subr.bf16.mxu0 %v3725_v52 }
0x1448   :  { %v2393_v5 = vpop.f32.mrb[28].mxu1 }
0x1449   :  { %v3485_v7 = vpop.f32.mrb[29].mxu1 }
0x144c   :  { %v2468_v10 = vpop.f32.mrb[24].mxu0 }
0x144d   :  { %v2469_v32 = vadd.f32 %v2468_v10, %v2393_v5  ;;  %v3496_v22 = vpop.f32.mrb[25].mxu0 }
0x144f   :  { %v2472_v36 = vadd.f32 %v4091_v48, %v2469_v32 }
0x1450   :  { %v2569_v23 = vpop.f32.mrb[30].mxu1  ;;  %v2642_v24 = vpop.f32.mrb[26].mxu0 }
0x1451   :  { %3843 = vtanh.f32 %v2472_v36  ;;  %v3507_v25 = vpop.f32.mrb[31].mxu1  ;;  %v2643_v26 = vadd.f32 %v2642_v24, %v2569_v23  ;;  %v3514_v0 = vpop.f32.mrb[27].mxu0  ;;  %v3045_v28 = vmul.f32 -1.442695, %v2472_v36 }
0x1453   :  { %v2646_v39 = vadd.f32 %v3867_v1, %v2643_v26 }
0x1455   :  { %3845 = vtanh.f32 %v2646_v39  ;;  %v3048_v48 = vmul.f32 -1.442695, %v2646_v39 }
0x1456   :  { %3847 = vpow2.f32 %v3045_v28 }
0x1457   :  { %3849 = vpow2.f32 %v3048_v48 }
0x145b   :  { %v3844_v40 = vpop.eup %3843 }
0x145c   :  { %2482 = vrot.lane.b32.xlu0 %v3844_v40, %s3897_s14 }
0x145f   :  { %v3846_v27 = vpop.eup %3845 }
0x1460   :  { %2656 = vrot.lane.b32.xlu1 %v3846_v27, %s3897_s14  ;;  %v3848_v29 = vpop.eup %3847 }
0x1461   :  { %v2476_v30 = vadd.f32 1.0, %v3848_v29  ;;  %v3850_v31 = vpop.eup %3849 }
0x1462   :  { %v2650_v33 = vadd.f32 1.0, %v3850_v31 }
0x1463   :  { %3851 = vrcp.f32 %v2476_v30 }
0x1464   :  { %3853 = vrcp.f32 %v2650_v33 }
0x146d   :  { %v3852_v34 = vpop.eup %3851 }
0x146e   :  { %v3854_v38 = vpop.eup %3853  ;;  %v2480_v43 = vmul.f32 %v3852_v34, %v4339_v6  ;;  %v2852_v6 = vld [vmem:[#allocation2 + $0x20] sm:$0xff] }
0x146f   :  { %v2654_v46 = vmul.f32 %v3854_v38, %v4343_v11 }
0x14ce   :  { %v2483_v35 = vpop.permute.xlu0 %2482 }
0x14cf   :  { %v2485_v37 = vmul.f32 %v3852_v34, %v2483_v35 }
0x14d1   :  { %2487 = vrot.lane.b32.xlu0 %v2485_v37, %s3898_s15 }
0x14d2   :  { %v2657_v41 = vpop.permute.xlu1 %2656 }
0x14d3   :  { %v2659_v42 = vmul.f32 %v3854_v38, %v2657_v41 }
0x14d5   :  { %2661 = vrot.lane.b32.xlu1 %v2659_v42, %s3898_s15 }
0x1543   :  { %v2488_v44 = vpop.permute.xlu0 %2487 }
0x1544   :  { %v4387_v45 = vadd.f32 %v2488_v44, %v2480_v43 }
0x1546   :  { %3855 = vtanh.f32 %v4387_v45 }
0x1547   :  { %v2662_v47 = vpop.permute.xlu1 %2661 }
0x1548   :  { %v2664_v49 = vadd.f32 %v2662_v47, %v2654_v46 }
0x154a   :  { %3857 = vtanh.f32 %v2664_v49 }
0x1550   :  { %v3856_v53 = vpop.eup %3855 }
0x1551   :  { %2493 = vrot.lane.b32.xlu0 %v3856_v53, %s3897_s14 }
0x1554   :  { %v3858_v54 = vpop.eup %3857 }
0x1555   :  { %2667 = vrot.lane.b32.xlu1 %v3858_v54, %s3897_s14 }
0x15c3   :  { %v2494_v55 = vpop.permute.xlu0 %2493 }
0x15c4   :  { %v2496_v56 = vmul.f32 %v3852_v34, %v2494_v55 }
0x15c6   :  { %2498 = vrot.lane.b32.xlu0 %v2496_v56, %s3898_s15 }
0x15c7   :  { %v2668_v57 = vpop.permute.xlu1 %2667 }
0x15c8   :  { %v2670_v58 = vmul.f32 %v3854_v38, %v2668_v57 }
0x15ca   :  { %2744 = vrot.lane.b32.xlu1 %v2670_v58, %s3898_s15 }
0x1638   :  { %v2499_v14 = vpop.permute.xlu0 %2498 }
0x1639   :  { %2501 = vst.msk [vmem:[#allocation2 + $0x30] sm:$0xff] %vm66_vm2, %v2499_v14  ;;  %3524 = vmatmul.mubr.msk.f32.vlgmr.msra.gmra.mrb[28].mxu0 %vm66_vm2, %v2499_v14 }
0x163a   :  { %3728 = vmatpush3.bf16.msra.mxu0 %v3725_v52  ;;  %3545 = vmatprep.mubr.msk.f32.mxu0 %vm66_vm2, %v2848_v62 }
0x163b   :  { %3730 = vmatprep.subr.bf16.mxu0 %v3729_v61 }
0x163c   :  { %v2745_v63 = vpop.permute.xlu1 %2744 }
0x163d   :  { %3535 = vmatmul.mubr.msk.f32.vlgmr.msra.gmra.mrb[32].mxu1 %vm66_vm2, %v2745_v63 }
0x163e   :  { %3732 = vmatpush3.bf16.msra.mxu0 %v3729_v61 }
0x1640   :  { %v2854_v9 = vld [vmem:[#allocation2 + $0x30] sm:$0xff] }
0x1641   :  { %3546 = vmatmul.mubr.msk.f32.vlgmr.msra.gmra.mrb[30].mxu0 %vm66_vm2, %v2849_v2 }
0x1642   :  { %3548 = vmatprep.mubr.msk.f32.mxu0 %vm66_vm2, %v2850_v3 }
0x1645   :  { %3549 = vmatmul.mubr.msk.f32.gmra.mrb[32].mxu0 %vm66_vm2, %v2851_v4 }
0x1646   :  { %3551 = vmatprep.mubr.msk.f32.mxu0 %vm66_vm2, %v2852_v6 }
0x1649   :  { %3552 = vmatmul.mubr.msk.f32.gmra.mrb[34].mxu0 %vm66_vm2, %v2853_v8 }
0x164a   :  { %3554 = vmatprep.mubr.msk.f32.mxu0 %vm66_vm2, %v2854_v9 }
0x170c   :  { %v2739_v11 = vpop.f32.mrb[28].mxu0 }
0x170d   :  { %v3525_v12 = vpop.f32.mrb[29].mxu0 }
0x1710   :  { %v2814_v13 = vpop.f32.mrb[32].mxu1 }
0x1711   :  { %v2815_v15 = vadd.f32 %v2814_v13, %v2739_v11  ;;  %v3536_v16 = vpop.f32.mrb[33].mxu1 }
0x1713   :  { %v2818_v19 = vadd.f32 %v3868_v18, %v2815_v15 }
0x1714   :  { %v3547_v20 = vpop.f32.mrb[30].mxu0 }
0x1715   :  { %3859 = vtanh.f32 %v2818_v19  ;;  %v2958_v21 = vadd.f32 %v3547_v20, %v3052_v17  ;;  %v2952_v5 = vpop.f32.mrb[31].mxu0  ;;  %v3051_v1 = vmul.f32 -1.442695, %v2818_v19 }
0x1716   :  { %v2953_v7 = vadd.f32 %v3052_v17, %v2952_v5 }
0x1717   :  { %2992 = vst.msk [vmem:[%s4468_s9 + $0x8] sm:$0xff] %vm140_vm1, %v2958_v21  ;;  %3861 = vpow2.f32 %v3051_v1 }
0x1718   :  { %2991 = vst.msk [vmem:[%s4468_s9] sm:$0xff] %vm140_vm1, %v2953_v7  ;;  %v3550_v10 = vpop.f32.mrb[32].mxu0 }
0x1719   :  { %v2968_v32 = vadd.f32 %v3550_v10, %v3052_v17  ;;  %v2962_v22 = vpop.f32.mrb[33].mxu0 }
0x171a   :  { %v2963_v36 = vadd.f32 %v3052_v17, %v2962_v22 }
0x171b   :  { %2994 = vst.msk [vmem:[%s4468_s9 + $0x18] sm:$0xff] %vm140_vm1, %v2968_v32 }
0x171c   :  { %2993 = vst.msk [vmem:[%s4468_s9 + $0x10] sm:$0xff] %vm140_vm1, %v2963_v36  ;;  %v3553_v23 = vpop.f32.mrb[34].mxu0 }
0x171d   :  { %v2978_v24 = vadd.f32 %v3553_v23, %v3052_v17  ;;  %v2972_v25 = vpop.f32.mrb[35].mxu0 }
0x171e   :  { %v2973_v26 = vadd.f32 %v3052_v17, %v2972_v25 }
0x171f   :  { %v3860_v0 = vpop.eup %3859  ;;  %2996 = vst.msk [vmem:[%s4468_s9 + $0x28] sm:$0xff] %vm140_vm1, %v2978_v24 }
0x1720   :  { %2995 = vst.msk [vmem:[%s4468_s9 + $0x20] sm:$0xff] %vm140_vm1, %v2973_v26  ;;  %2828 = vrot.lane.b32.xlu0 %v3860_v0, %s3897_s14 }
0x1721   :  { %v3862_v39 = vpop.eup %3861 }
0x1722   :  { %v2822_v40 = vadd.f32 1.0, %v3862_v39 }
0x1724   :  { %3863 = vrcp.f32 %v2822_v40 }
0x172e   :  { %v3864_v27 = vpop.eup %3863 }
0x172f   :  { %v2826_v29 = vmul.f32 %v3864_v27, %v4387_v45 }
0x1792   :  { %v2829_v28 = vpop.permute.xlu0 %2828 }
0x1793   :  { %v2831_v48 = vmul.f32 %v3864_v27, %v2829_v28 }
0x1795   :  { %2833 = vrot.lane.b32.xlu1 %v2831_v48, %s3898_s15 }
0x1807   :  { %v2834_v30 = vpop.permute.xlu1 %2833 }
0x1808   :  { %v2836_v31 = vadd.f32 %v2834_v30, %v2826_v29 }
0x180a   :  { %3865 = vtanh.f32 %v2836_v31 }
0x1814   :  { %v3866_v33 = vpop.eup %3865 }
0x1815   :  { %2839 = vrot.lane.b32.xlu0 %v3866_v33, %s3897_s14 }
0x1887   :  { %v2840_v34 = vpop.permute.xlu0 %2839 }
0x1888   :  { %v2842_v35 = vmul.f32 %v3864_v27, %v2840_v34 }
0x188a   :  { %2844 = vrot.lane.b32.xlu1 %v2842_v35, %s3898_s15 }
0x18fc   :  { %v2845_v37 = vpop.permute.xlu1 %2844 }
0x18fd   :  { %2847 = vst.msk [vmem:[#allocation2 + $0x38] sm:$0xff] %vm66_vm2, %v2845_v37 }
0x1904   :  { %v2855_v38 = vld [vmem:[#allocation2 + $0x38] sm:$0xff] }
0x1905   :  { %3555 = vmatmul.mubr.msk.f32.gmra.mrb[36].mxu0 %vm66_vm2, %v2855_v38 }
0x19d8   :  { %v3556_v41 = vpop.f32.mrb[36].mxu0 }
0x19d9   :  { %v2988_v42 = vadd.f32 %v3556_v41, %v3052_v17  ;;  %v2982_v43 = vpop.f32.mrb[37].mxu0 }
0x19da   :  { %v2983_v44 = vadd.f32 %v3052_v17, %v2982_v43 }
0x19db   :  { %2998 = vst.msk [vmem:[%s4468_s9 + $0x38] sm:$0xff] %vm140_vm1, %v2988_v42 }
0x19dc   :  { %2997 = vst.msk [vmem:[%s4468_s9 + $0x30] sm:$0xff] %vm140_vm1, %v2983_v44 }
0x19dd   :  { %3003 = vsyncpa [#allocation4], 1 }

</bundles_post_ra>
